<compile_context>
chip_gen: v6e
topology: v6e:2x2x1
jax: 0.10.0
libtpu: 0.0.40
codegen_flags: <defaults>
</compile_context>

<pallas_src>
import jax
import jax.numpy as jnp
from jax.experimental import pallas as pl
from jax.experimental.pallas import tpu as pltpu

IN_DIM, H1_DIM, H2_DIM, OUT_DIM = 784, 400, 128, 1


def _leaky_relu(x, slope=0.2):
    return jnp.where(x > 0, x, slope * x)


def d_mlp_kernel(x_ref, w1_ref, b1_ref, w2_ref, b2_ref, w3_ref, b3_ref, o_ref):
    # l1: (TB,784) @ (784,400) + (1,400) -> leaky_relu(0.2)
    h1 = jnp.dot(x_ref[...], w1_ref[...], preferred_element_type=jnp.float32)
    h1 = _leaky_relu(h1 + b1_ref[...])
    # l2: (TB,400) @ (400,128) + (1,128) -> leaky_relu(0.2)
    h2 = jnp.dot(h1, w2_ref[...], preferred_element_type=jnp.float32)
    h2 = _leaky_relu(h2 + b2_ref[...])
    # l3: (TB,128) x (1,128) row -> lane reduction (avoids N=1 MXU matmul)
    pred = jnp.sum(h2 * w3_ref[...], axis=-1, keepdims=True)
    o_ref[...] = (pred + b3_ref[0, 0]).astype(o_ref.dtype)


def d_forward(x, params, *, block_batch=512):
    w1, b1, w2, b2, w3, b3 = params
    B = x.shape[0]

    # Batch tile: full batch if small, otherwise a multiple-of-8 tile that the
    # pipeline double-buffers. (Second-to-last block dim must be a multiple of
    # 8 or equal to the full dim.)
    if B <= block_batch:
        TB = B
    else:
        TB = block_batch
    grid = (pl.cdiv(B, TB),)

    # (128,1) -> (1,128) row so the last layer is a VPU multiply + reduce.
    w3_row = w3.reshape(1, H2_DIM)

    flops = 2 * B * (IN_DIM * H1_DIM + H1_DIM * H2_DIM + H2_DIM)
    bytes_accessed = 4 * (
        B * IN_DIM                                  # x
        + IN_DIM * H1_DIM + H1_DIM                  # w1, b1
        + H1_DIM * H2_DIM + H2_DIM                  # w2, b2
        + H2_DIM + 1                                # w3, b3
        + B * OUT_DIM                               # out
    )

    out = pl.pallas_call(
        d_mlp_kernel,
        out_shape=jax.ShapeDtypeStruct((B, OUT_DIM), jnp.float32),
        grid=grid,
        in_specs=[
            # x: one batch tile per grid step (double-buffered by the pipeline)
            pl.BlockSpec((TB, IN_DIM), lambda i: (i, 0)),
            # weights / biases: constant block index -> stay resident in VMEM
            pl.BlockSpec((IN_DIM, H1_DIM), lambda i: (0, 0)),
            pl.BlockSpec((1, H1_DIM), lambda i: (0, 0)),
            pl.BlockSpec((H1_DIM, H2_DIM), lambda i: (0, 0)),
            pl.BlockSpec((1, H2_DIM), lambda i: (0, 0)),
            pl.BlockSpec((1, H2_DIM), lambda i: (0, 0)),
            # b3 is a single scalar -> SMEM (no padded VMEM tile / extra DMA)
            pl.BlockSpec(memory_space=pltpu.MemorySpace.SMEM),
        ],
        out_specs=pl.BlockSpec((TB, OUT_DIM), lambda i: (i, 0)),
        compiler_params=pltpu.CompilerParams(
            dimension_semantics=("parallel",),
        ),
        cost_estimate=pl.CostEstimate(
            flops=flops, bytes_accessed=bytes_accessed, transcendentals=0
        ),
    )(x, w1, b1, w2, b2, w3_row, b3)
    return out


def init_params(key):
    # Deterministic init mimicking nn.Linear default: U(-1/sqrt(fan_in), +1/sqrt(fan_in)).
    def linear(key, fan_in, fan_out):
        kw, kb = jax.random.split(key)
        bound = 1.0 / jnp.sqrt(fan_in)
        # stored as (in, out) so kernel computes x @ W
        w = jax.random.uniform(kw, (fan_in, fan_out), jnp.float32, -bound, bound)
        b = jax.random.uniform(kb, (1, fan_out), jnp.float32, -bound, bound)
        return w, b

    k1, k2, k3 = jax.random.split(key, 3)
    w1, b1 = linear(k1, IN_DIM, H1_DIM)
    w2, b2 = linear(k2, H1_DIM, H2_DIM)
    w3, b3 = linear(k3, H2_DIM, OUT_DIM)
    return (w1, b1, w2, b2, w3, b3)


def d_forward_ref(x, params):
    w1, b1, w2, b2, w3, b3 = params
    h1 = _leaky_relu(x @ w1 + b1)
    h2 = _leaky_relu(h1 @ w2 + b2)
    return h2 @ w3 + b3


if __name__ == "__main__":
    key = jax.random.PRNGKey(0)
    kp, kx = jax.random.split(key)
    params = init_params(kp)

    # Small-shape smoke test (single tile path).
    B = 8
    x = jax.random.normal(kx, (B, IN_DIM), jnp.float32)
    out = jax.block_until_ready(d_forward(x, params))
    ref = d_forward_ref(x, params)
    assert out.shape == (B, OUT_DIM), out.shape
    assert jnp.allclose(out, ref, atol=1e-4, rtol=1e-4), (
        float(jnp.max(jnp.abs(out - ref)))
    )

    # Multi-tile path (grid > 1) to exercise the pipelined batch tiling.
    B2 = 1024
    x2 = jax.random.normal(jax.random.PRNGKey(1), (B2, IN_DIM), jnp.float32)
    out2 = jax.block_until_ready(d_forward(x2, params, block_batch=512))
    ref2 = d_forward_ref(x2, params)
    assert out2.shape == (B2, OUT_DIM), out2.shape
    assert jnp.allclose(out2, ref2, atol=1e-4, rtol=1e-4), (
        float(jnp.max(jnp.abs(out2 - ref2)))
    )

    print("KERNEL_OK")
</pallas_src>

<mosaic_0001>
module attributes {stable_mosaic.version = 11 : i64} {
  func.func @d_mlp_kernel(%arg0: i32, %arg1: memref<8x784xf32, #tpu.memory_space<vmem>>, %arg2: memref<784x400xf32, #tpu.memory_space<vmem>>, %arg3: memref<1x400xf32, #tpu.memory_space<vmem>>, %arg4: memref<400x128xf32, #tpu.memory_space<vmem>>, %arg5: memref<1x128xf32, #tpu.memory_space<vmem>>, %arg6: memref<1x128xf32, #tpu.memory_space<vmem>>, %arg7: memref<1x1xf32, #tpu.memory_space<smem>>, %arg8: memref<8x1xf32, #tpu.memory_space<vmem>>) attributes {dimension_semantics = [#tpu.dimension_semantics<parallel>], iteration_bounds = array<i64: 1>, scalar_prefetch = 0 : i64, scratch_operands = 0 : i64, tpu.core_type = #tpu.core_type<tc>, window_params = [{transform_indices = @transform_0, window_bounds = array<i64: 8, 784>}, {pipeline_mode = #tpu.pipeline_mode<synchronous>, transform_indices = @transform_1, window_bounds = array<i64: 784, 400>}, {pipeline_mode = #tpu.pipeline_mode<synchronous>, transform_indices = @transform_2, window_bounds = array<i64: 1, 400>}, {pipeline_mode = #tpu.pipeline_mode<synchronous>, transform_indices = @transform_3, window_bounds = array<i64: 400, 128>}, {pipeline_mode = #tpu.pipeline_mode<synchronous>, transform_indices = @transform_4, window_bounds = array<i64: 1, 128>}, {pipeline_mode = #tpu.pipeline_mode<synchronous>, transform_indices = @transform_5, window_bounds = array<i64: 1, 128>}, {transform_indices = @transform_6, window_bounds = array<i64: 1, 1>}, {transform_indices = @transform_7, window_bounds = array<i64: 8, 1>}]} {
    %c0 = arith.constant 0 : index
    %c0_0 = arith.constant 0 : index
    %0 = vector.load %arg1[%c0, %c0_0] : memref<8x784xf32, #tpu.memory_space<vmem>>, vector<8x784xf32>
    %c0_1 = arith.constant 0 : index
    %c0_2 = arith.constant 0 : index
    %1 = vector.load %arg2[%c0_1, %c0_2] : memref<784x400xf32, #tpu.memory_space<vmem>>, vector<784x400xf32>
    %cst = arith.constant dense<0.000000e+00> : vector<8x400xf32>
    %2 = tpu.matmul %0, %1, %cst {dimension_numbers = #tpu.dot_dimension_numbers<[1], [0], [0], [1], [0, 0, 1, 1], [], []>} : vector<8x784xf32>, vector<784x400xf32>, vector<8x400xf32> -> vector<8x400xf32>
    %c0_3 = arith.constant 0 : index
    %c0_4 = arith.constant 0 : index
    %3 = vector.load %arg3[%c0_3, %c0_4] : memref<1x400xf32, #tpu.memory_space<vmem>>, vector<1x400xf32>
    %4 = vector.broadcast %3 : vector<1x400xf32> to vector<8x400xf32>
    %5 = arith.addf %2, %4 : vector<8x400xf32>
    %cst_5 = arith.constant 0.000000e+00 : f32
    %6 = vector.broadcast %cst_5 : f32 to vector<8x400xf32>
    %7 = arith.cmpf ogt, %5, %6 : vector<8x400xf32>
    %cst_6 = arith.constant 2.000000e-01 : f32
    %8 = vector.broadcast %cst_6 : f32 to vector<8x400xf32>
    %9 = arith.mulf %8, %5 : vector<8x400xf32>
    %10 = arith.select %7, %5, %9 : vector<8x400xi1>, vector<8x400xf32>
    %c0_7 = arith.constant 0 : index
    %c0_8 = arith.constant 0 : index
    %11 = vector.load %arg4[%c0_7, %c0_8] : memref<400x128xf32, #tpu.memory_space<vmem>>, vector<400x128xf32>
    %cst_9 = arith.constant dense<0.000000e+00> : vector<8x128xf32>
    %12 = tpu.matmul %10, %11, %cst_9 {dimension_numbers = #tpu.dot_dimension_numbers<[1], [0], [0], [1], [0, 0, 1, 1], [], []>} : vector<8x400xf32>, vector<400x128xf32>, vector<8x128xf32> -> vector<8x128xf32>
    %c0_10 = arith.constant 0 : index
    %c0_11 = arith.constant 0 : index
    %13 = vector.load %arg5[%c0_10, %c0_11] : memref<1x128xf32, #tpu.memory_space<vmem>>, vector<1x128xf32>
    %14 = vector.broadcast %13 : vector<1x128xf32> to vector<8x128xf32>
    %15 = arith.addf %12, %14 : vector<8x128xf32>
    %cst_12 = arith.constant 0.000000e+00 : f32
    %16 = vector.broadcast %cst_12 : f32 to vector<8x128xf32>
    %17 = arith.cmpf ogt, %15, %16 : vector<8x128xf32>
    %cst_13 = arith.constant 2.000000e-01 : f32
    %18 = vector.broadcast %cst_13 : f32 to vector<8x128xf32>
    %19 = arith.mulf %18, %15 : vector<8x128xf32>
    %20 = arith.select %17, %15, %19 : vector<8x128xi1>, vector<8x128xf32>
    %c0_14 = arith.constant 0 : index
    %c0_15 = arith.constant 0 : index
    %21 = vector.load %arg6[%c0_14, %c0_15] : memref<1x128xf32, #tpu.memory_space<vmem>>, vector<1x128xf32>
    %22 = vector.broadcast %21 : vector<1x128xf32> to vector<8x128xf32>
    %23 = arith.mulf %20, %22 : vector<8x128xf32>
    %cst_16 = arith.constant dense<0.000000e+00> : vector<8xf32>
    %24 = vector.multi_reduction <add>, %23, %cst_16 [1] : vector<8x128xf32> to vector<8xf32>
    %25 = vector.shape_cast %24 : vector<8xf32> to vector<8x1xf32>
    %c0_17 = arith.constant 0 : index
    %c0_18 = arith.constant 0 : index
    %26 = memref.load %arg7[%c0_17, %c0_18] : memref<1x1xf32, #tpu.memory_space<smem>>
    %27 = vector.broadcast %26 : f32 to vector<8x1xf32>
    %28 = arith.addf %25, %27 : vector<8x1xf32>
    %c0_19 = arith.constant 0 : index
    %c0_20 = arith.constant 0 : index
    %29 = vector.load %arg8[%c0_19, %c0_20] : memref<8x1xf32, #tpu.memory_space<vmem>>, vector<8x1xf32>
    tpu.vector_store %arg8[%c0_19, %c0_20], %28 {strides = array<i32>} : memref<8x1xf32, #tpu.memory_space<vmem>>, vector<8x1xf32>,
    return
  }
  func.func @transform_0(%arg0: i32) -> (i32, i32) {
    %c0_i32 = arith.constant 0 : i32
    %c0_i32_0 = arith.constant 0 : i32
    return %arg0, %c0_i32 : i32, i32
  }
  func.func @transform_1(%arg0: i32) -> (i32, i32) {
    %c0_i32 = arith.constant 0 : i32
    %c0_i32_0 = arith.constant 0 : i32
    %c0_i32_1 = arith.constant 0 : i32
    return %c0_i32, %c0_i32_0 : i32, i32
  }
  func.func @transform_2(%arg0: i32) -> (i32, i32) {
    %c0_i32 = arith.constant 0 : i32
    %c0_i32_0 = arith.constant 0 : i32
    %c0_i32_1 = arith.constant 0 : i32
    return %c0_i32, %c0_i32_0 : i32, i32
  }
  func.func @transform_3(%arg0: i32) -> (i32, i32) {
    %c0_i32 = arith.constant 0 : i32
    %c0_i32_0 = arith.constant 0 : i32
    %c0_i32_1 = arith.constant 0 : i32
    return %c0_i32, %c0_i32_0 : i32, i32
  }
  func.func @transform_4(%arg0: i32) -> (i32, i32) {
    %c0_i32 = arith.constant 0 : i32
    %c0_i32_0 = arith.constant 0 : i32
    %c0_i32_1 = arith.constant 0 : i32
    return %c0_i32, %c0_i32_0 : i32, i32
  }
  func.func @transform_5(%arg0: i32) -> (i32, i32) {
    %c0_i32 = arith.constant 0 : i32
    %c0_i32_0 = arith.constant 0 : i32
    %c0_i32_1 = arith.constant 0 : i32
    return %c0_i32, %c0_i32_0 : i32, i32
  }
  func.func @transform_6(%arg0: i32) -> (i32, i32) {
    %c0_i32 = arith.constant 0 : i32
    %c0_i32_0 = arith.constant 0 : i32
    %c0_i32_1 = arith.constant 0 : i32
    return %c0_i32, %c0_i32_0 : i32, i32
  }
  func.func @transform_7(%arg0: i32) -> (i32, i32) {
    %c0_i32 = arith.constant 0 : i32
    %c0_i32_0 = arith.constant 0 : i32
    return %arg0, %c0_i32 : i32, i32
  }
}

</mosaic_0001>

<bundles_post_ra>
// kernel: tpu_custom_call.1
= control target key start
LH: loop header
LB: loop body
LE: loop exit
PB: predicated region body
PF: predicated region fallthrough
CT: control target
= control target key end

     0   :  { %vm448_vm0 = vcmask 130048   ;;  %vm1248_vm6 = vcmask 7168   ;;  %s2749_s1 = inlined_call_operand.vmem [shape: f32[784,400], index: 1, kind: input, shape index: {}]   ;;  %s2750_s0 = inlined_call_operand.vmem [shape: f32[8,784], index: 0, kind: input, shape index: {}]   ;;  %s2751_s3 = inlined_call_operand.vmem [shape: f32[400,128], index: 3, kind: input, shape index: {}]   ;;  %s2752_s2 = inlined_call_operand.vmem [shape: f32[1,400], index: 2, kind: input, shape index: {}]   ;;  %s2753_s4 = inlined_call_operand.vmem [shape: f32[1,128], index: 4, kind: input, shape index: {}]   ;;  %s2754_s5 = inlined_call_operand.vmem [shape: f32[1,128], index: 5, kind: input, shape index: {}]   ;;  %s2755_s6 = inlined_call_operand.<no memory space> [shape: f32[1,1], index: 6, kind: input, shape index: {}]   ;;  %s2756_s7 = inlined_call_operand.vmem [shape: f32[8,1], index: 7, kind: output, shape index: {}]  }
   0x1   :  { %v95_v0 = vld [vmem:[%s2749_s1 + $0x1e8] sm:$0xff]  ;;  %v94_v2 = vld [vmem:[%s2749_s1 + $0x1e0] sm:$0xff] }
   0x2   :  { %v223_v1 = vld [vmem:[%s2749_s1 + $0x5e8] sm:$0xff]  ;;  %452 = vmatprep.subr.mxu0 %v95_v0  ;;  %v222_v3 = vld [vmem:[%s2749_s1 + $0x5e0] sm:$0xff] }
   0x3   :  { %523 = vmatprep.subr.mxu1 %v223_v1  ;;  %v91_v4 = vld [vmem:[%s2749_s1 + $0x1c8] sm:$0xff]  ;;  %453 = vmatpush1.msra.mxu0 %v94_v2  ;;  %v90_v6 = vld [vmem:[%s2749_s1 + $0x1c0] sm:$0xff] }
   0x4   :  { %v219_v5 = vld [vmem:[%s2749_s1 + $0x5c8] sm:$0xff]  ;;  %524 = vmatpush1.msra.mxu1 %v222_v3  ;;  %v218_v7 = vld [vmem:[%s2749_s1 + $0x5c0] sm:$0xff]  ;;  %454 = vmatprep.subr.mxu0 %v91_v4 }
   0x5   :  { %v87_v8 = vld [vmem:[%s2749_s1 + $0x1a8] sm:$0xff]  ;;  %525 = vmatprep.subr.mxu1 %v219_v5  ;;  %v86_v10 = vld [vmem:[%s2749_s1 + $0x1a0] sm:$0xff]  ;;  %455 = vmatpush1.msra.mxu0 %v90_v6 }
   0x6   :  { %v215_v9 = vld [vmem:[%s2749_s1 + $0x5a8] sm:$0xff]  ;;  %v214_v11 = vld [vmem:[%s2749_s1 + $0x5a0] sm:$0xff]  ;;  %526 = vmatpush1.msra.mxu1 %v218_v7  ;;  %456 = vmatprep.subr.mxu0 %v87_v8 }
   0x7   :  { %v83_v12 = vld [vmem:[%s2749_s1 + $0x188] sm:$0xff]  ;;  %527 = vmatprep.subr.mxu1 %v215_v9  ;;  %v82_v14 = vld [vmem:[%s2749_s1 + $0x180] sm:$0xff]  ;;  %457 = vmatpush1.msra.mxu0 %v86_v10 }
   0x8   :  { %v211_v13 = vld [vmem:[%s2749_s1 + $0x588] sm:$0xff]  ;;  %v210_v15 = vld [vmem:[%s2749_s1 + $0x580] sm:$0xff]  ;;  %528 = vmatpush1.msra.mxu1 %v214_v11  ;;  %458 = vmatprep.subr.mxu0 %v83_v12 }
   0x9   :  { %v79_v16 = vld [vmem:[%s2749_s1 + $0x168] sm:$0xff]  ;;  %529 = vmatprep.subr.mxu1 %v211_v13  ;;  %v78_v18 = vld [vmem:[%s2749_s1 + $0x160] sm:$0xff]  ;;  %459 = vmatpush1.msra.mxu0 %v82_v14 }
   0xa   :  { %v207_v17 = vld [vmem:[%s2749_s1 + $0x568] sm:$0xff]  ;;  %v206_v19 = vld [vmem:[%s2749_s1 + $0x560] sm:$0xff]  ;;  %530 = vmatpush1.msra.mxu1 %v210_v15  ;;  %460 = vmatprep.subr.mxu0 %v79_v16 }
   0xb   :  { %v75_v20 = vld [vmem:[%s2749_s1 + $0x148] sm:$0xff]  ;;  %531 = vmatprep.subr.mxu1 %v207_v17  ;;  %v74_v22 = vld [vmem:[%s2749_s1 + $0x140] sm:$0xff]  ;;  %461 = vmatpush1.msra.mxu0 %v78_v18 }
   0xc   :  { %v203_v21 = vld [vmem:[%s2749_s1 + $0x548] sm:$0xff]  ;;  %v202_v23 = vld [vmem:[%s2749_s1 + $0x540] sm:$0xff]  ;;  %532 = vmatpush1.msra.mxu1 %v206_v19  ;;  %462 = vmatprep.subr.mxu0 %v75_v20 }
   0xd   :  { %v71_v24 = vld [vmem:[%s2749_s1 + $0x128] sm:$0xff]  ;;  %533 = vmatprep.subr.mxu1 %v203_v21  ;;  %v70_v26 = vld [vmem:[%s2749_s1 + $0x120] sm:$0xff]  ;;  %463 = vmatpush1.msra.mxu0 %v74_v22 }
   0xe   :  { %v199_v25 = vld [vmem:[%s2749_s1 + $0x528] sm:$0xff]  ;;  %v198_v27 = vld [vmem:[%s2749_s1 + $0x520] sm:$0xff]  ;;  %534 = vmatpush1.msra.mxu1 %v202_v23  ;;  %464 = vmatprep.subr.mxu0 %v71_v24 }
   0xf   :  { %v67_v28 = vld [vmem:[%s2749_s1 + $0x108] sm:$0xff]  ;;  %535 = vmatprep.subr.mxu1 %v199_v25  ;;  %v66_v30 = vld [vmem:[%s2749_s1 + $0x100] sm:$0xff]  ;;  %465 = vmatpush1.msra.mxu0 %v70_v26 }
  0x10   :  { %v195_v29 = vld [vmem:[%s2749_s1 + $0x508] sm:$0xff]  ;;  %v194_v31 = vld [vmem:[%s2749_s1 + $0x500] sm:$0xff]  ;;  %536 = vmatpush1.msra.mxu1 %v198_v27  ;;  %466 = vmatprep.subr.mxu0 %v67_v28 }
  0x11   :  { %v63_v32 = vld [vmem:[%s2749_s1 + $0xe8] sm:$0xff]  ;;  %537 = vmatprep.subr.mxu1 %v195_v29  ;;  %v62_v34 = vld [vmem:[%s2749_s1 + $0xe0] sm:$0xff]  ;;  %467 = vmatpush1.msra.mxu0 %v66_v30 }
  0x12   :  { %v191_v33 = vld [vmem:[%s2749_s1 + $0x4e8] sm:$0xff]  ;;  %v190_v35 = vld [vmem:[%s2749_s1 + $0x4e0] sm:$0xff]  ;;  %538 = vmatpush1.msra.mxu1 %v194_v31  ;;  %468 = vmatprep.subr.mxu0 %v63_v32 }
  0x13   :  { %v59_v36 = vld [vmem:[%s2749_s1 + $0xc8] sm:$0xff]  ;;  %539 = vmatprep.subr.mxu1 %v191_v33  ;;  %v58_v38 = vld [vmem:[%s2749_s1 + $0xc0] sm:$0xff]  ;;  %469 = vmatpush1.msra.mxu0 %v62_v34 }
  0x14   :  { %v187_v37 = vld [vmem:[%s2749_s1 + $0x4c8] sm:$0xff]  ;;  %v186_v39 = vld [vmem:[%s2749_s1 + $0x4c0] sm:$0xff]  ;;  %540 = vmatpush1.msra.mxu1 %v190_v35  ;;  %470 = vmatprep.subr.mxu0 %v59_v36 }
  0x15   :  { %v55_v40 = vld [vmem:[%s2749_s1 + $0xa8] sm:$0xff]  ;;  %541 = vmatprep.subr.mxu1 %v187_v37  ;;  %v54_v42 = vld [vmem:[%s2749_s1 + $0xa0] sm:$0xff]  ;;  %471 = vmatpush1.msra.mxu0 %v58_v38 }
  0x16   :  { %v183_v41 = vld [vmem:[%s2749_s1 + $0x4a8] sm:$0xff]  ;;  %v182_v43 = vld [vmem:[%s2749_s1 + $0x4a0] sm:$0xff]  ;;  %542 = vmatpush1.msra.mxu1 %v186_v39  ;;  %472 = vmatprep.subr.mxu0 %v55_v40 }
  0x17   :  { %v51_v44 = vld [vmem:[%s2749_s1 + $0x88] sm:$0xff]  ;;  %543 = vmatprep.subr.mxu1 %v183_v41  ;;  %v50_v46 = vld [vmem:[%s2749_s1 + $0x80] sm:$0xff]  ;;  %473 = vmatpush1.msra.mxu0 %v54_v42 }
  0x18   :  { %v179_v45 = vld [vmem:[%s2749_s1 + $0x488] sm:$0xff]  ;;  %v178_v47 = vld [vmem:[%s2749_s1 + $0x480] sm:$0xff]  ;;  %544 = vmatpush1.msra.mxu1 %v182_v43  ;;  %474 = vmatprep.subr.mxu0 %v51_v44 }
  0x19   :  { %v47_v48 = vld [vmem:[%s2749_s1 + $0x68] sm:$0xff]  ;;  %545 = vmatprep.subr.mxu1 %v179_v45  ;;  %v46_v50 = vld [vmem:[%s2749_s1 + $0x60] sm:$0xff]  ;;  %475 = vmatpush1.msra.mxu0 %v50_v46 }
  0x1a   :  { %v175_v49 = vld [vmem:[%s2749_s1 + $0x468] sm:$0xff]  ;;  %v174_v51 = vld [vmem:[%s2749_s1 + $0x460] sm:$0xff]  ;;  %546 = vmatpush1.msra.mxu1 %v178_v47  ;;  %476 = vmatprep.subr.mxu0 %v47_v48 }
  0x1b   :  { %v43_v52 = vld [vmem:[%s2749_s1 + $0x48] sm:$0xff]  ;;  %547 = vmatprep.subr.mxu1 %v175_v49  ;;  %v42_v54 = vld [vmem:[%s2749_s1 + $0x40] sm:$0xff]  ;;  %477 = vmatpush1.msra.mxu0 %v46_v50 }
  0x1c   :  { %v171_v53 = vld [vmem:[%s2749_s1 + $0x448] sm:$0xff]  ;;  %v170_v55 = vld [vmem:[%s2749_s1 + $0x440] sm:$0xff]  ;;  %548 = vmatpush1.msra.mxu1 %v174_v51  ;;  %478 = vmatprep.subr.mxu0 %v43_v52 }
  0x1d   :  { %v39_v56 = vld [vmem:[%s2749_s1 + $0x28] sm:$0xff]  ;;  %549 = vmatprep.subr.mxu1 %v171_v53  ;;  %v38_v58 = vld [vmem:[%s2749_s1 + $0x20] sm:$0xff]  ;;  %479 = vmatpush1.msra.mxu0 %v42_v54 }
  0x1e   :  { %v167_v57 = vld [vmem:[%s2749_s1 + $0x428] sm:$0xff]  ;;  %v166_v59 = vld [vmem:[%s2749_s1 + $0x420] sm:$0xff]  ;;  %550 = vmatpush1.msra.mxu1 %v170_v55  ;;  %480 = vmatprep.subr.mxu0 %v39_v56 }
  0x1f   :  { %v35_v60 = vld [vmem:[%s2749_s1 + $0x8] sm:$0xff]  ;;  %551 = vmatprep.subr.mxu1 %v167_v57  ;;  %v34_v62 = vld [vmem:[%s2749_s1] sm:$0xff]  ;;  %481 = vmatpush1.msra.mxu0 %v38_v58 }
  0x20   :  { %v163_v61 = vld [vmem:[%s2749_s1 + $0x408] sm:$0xff]  ;;  %v162_v63 = vld [vmem:[%s2749_s1 + $0x400] sm:$0xff]  ;;  %552 = vmatpush1.msra.mxu1 %v166_v59  ;;  %482 = vmatprep.subr.mxu0 %v35_v60 }
  0x21   :  { %v159_v0 = vld [vmem:[%s2749_s1 + $0x3e8] sm:$0xff]  ;;  %553 = vmatprep.subr.mxu1 %v163_v61  ;;  %v158_v2 = vld [vmem:[%s2749_s1 + $0x3e0] sm:$0xff]  ;;  %483 = vmatpush1.msra.mxu0 %v34_v62 }
  0x22   :  { %v287_v1 = vld [vmem:[%s2749_s1 + $0x7e8] sm:$0xff]  ;;  %v286_v3 = vld [vmem:[%s2749_s1 + $0x7e0] sm:$0xff]  ;;  %554 = vmatpush1.msra.mxu1 %v162_v63  ;;  %484 = vmatprep.subr.mxu0 %v159_v0 }
  0x23   :  { %v155_v4 = vld [vmem:[%s2749_s1 + $0x3c8] sm:$0xff]  ;;  %555 = vmatprep.subr.mxu1 %v287_v1  ;;  %v154_v6 = vld [vmem:[%s2749_s1 + $0x3c0] sm:$0xff]  ;;  %485 = vmatpush2.msra.mxu0 %v158_v2  ;;  %v30_v1 = vld [vmem:[%s2750_s0 + $0x18] sm:$0xff] }
  0x24   :  { %v283_v5 = vld [vmem:[%s2749_s1 + $0x7c8] sm:$0xff]  ;;  %v282_v7 = vld [vmem:[%s2749_s1 + $0x7c0] sm:$0xff]  ;;  %556 = vmatpush2.msra.mxu1 %v286_v3  ;;  %486 = vmatprep.subr.mxu0 %v155_v4  ;;  %v29_v3 = vld [vmem:[%s2750_s0 + $0x10] sm:$0xff] }
  0x25   :  { %v151_v8 = vld [vmem:[%s2749_s1 + $0x3a8] sm:$0xff]  ;;  %557 = vmatprep.subr.mxu1 %v283_v5  ;;  %v150_v10 = vld [vmem:[%s2749_s1 + $0x3a0] sm:$0xff]  ;;  %487 = vmatpush2.msra.mxu0 %v154_v6 }
  0x26   :  { %v279_v9 = vld [vmem:[%s2749_s1 + $0x7a8] sm:$0xff]  ;;  %v278_v11 = vld [vmem:[%s2749_s1 + $0x7a0] sm:$0xff]  ;;  %558 = vmatpush2.msra.mxu1 %v282_v7  ;;  %488 = vmatprep.subr.mxu0 %v151_v8 }
  0x27   :  { %v147_v12 = vld [vmem:[%s2749_s1 + $0x388] sm:$0xff]  ;;  %559 = vmatprep.subr.mxu1 %v279_v9  ;;  %v146_v14 = vld [vmem:[%s2749_s1 + $0x380] sm:$0xff]  ;;  %489 = vmatpush2.msra.mxu0 %v150_v10 }
  0x28   :  { %v275_v13 = vld [vmem:[%s2749_s1 + $0x788] sm:$0xff]  ;;  %v274_v15 = vld [vmem:[%s2749_s1 + $0x780] sm:$0xff]  ;;  %560 = vmatpush2.msra.mxu1 %v278_v11  ;;  %490 = vmatprep.subr.mxu0 %v147_v12 }
  0x29   :  { %v143_v16 = vld [vmem:[%s2749_s1 + $0x368] sm:$0xff]  ;;  %561 = vmatprep.subr.mxu1 %v275_v13  ;;  %v142_v18 = vld [vmem:[%s2749_s1 + $0x360] sm:$0xff]  ;;  %491 = vmatpush2.msra.mxu0 %v146_v14  ;;  %v33_v13 = vld [vmem:[%s2750_s0 + $0x30] sm:$0xff] }
  0x2a   :  { %v271_v17 = vld [vmem:[%s2749_s1 + $0x768] sm:$0xff]  ;;  %v270_v19 = vld [vmem:[%s2749_s1 + $0x760] sm:$0xff]  ;;  %562 = vmatpush2.msra.mxu1 %v274_v15  ;;  %492 = vmatprep.subr.mxu0 %v143_v16  ;;  %v97_v14 = vld [vmem:[%s2749_s1 + $0x1f8] sm:$0xff] }
  0x2b   :  { %v139_v20 = vld [vmem:[%s2749_s1 + $0x348] sm:$0xff]  ;;  %563 = vmatprep.subr.mxu1 %v271_v17  ;;  %v138_v22 = vld [vmem:[%s2749_s1 + $0x340] sm:$0xff]  ;;  %493 = vmatpush2.msra.mxu0 %v142_v18  ;;  %v96_v16 = vld [vmem:[%s2749_s1 + $0x1f0] sm:$0xff]  ;;  %v1298_v17 = vmov 0.0  }
  0x2c   :  { %v267_v21 = vld [vmem:[%s2749_s1 + $0x748] sm:$0xff]  ;;  %v266_v23 = vld [vmem:[%s2749_s1 + $0x740] sm:$0xff]  ;;  %564 = vmatpush2.msra.mxu1 %v270_v19  ;;  %494 = vmatprep.subr.mxu0 %v139_v20  ;;  %v93_v19 = vld [vmem:[%s2749_s1 + $0x1d8] sm:$0xff] }
  0x2d   :  { %v135_v24 = vld [vmem:[%s2749_s1 + $0x328] sm:$0xff]  ;;  %565 = vmatprep.subr.mxu1 %v267_v21  ;;  %v134_v26 = vld [vmem:[%s2749_s1 + $0x320] sm:$0xff]  ;;  %495 = vmatpush2.msra.mxu0 %v138_v22  ;;  %v92_v21 = vld [vmem:[%s2749_s1 + $0x1d0] sm:$0xff] }
  0x2e   :  { %v263_v25 = vld [vmem:[%s2749_s1 + $0x728] sm:$0xff]  ;;  %v262_v27 = vld [vmem:[%s2749_s1 + $0x720] sm:$0xff]  ;;  %566 = vmatpush2.msra.mxu1 %v266_v23  ;;  %496 = vmatprep.subr.mxu0 %v135_v24  ;;  %v89_v23 = vld [vmem:[%s2749_s1 + $0x1b8] sm:$0xff] }
  0x2f   :  { %v131_v28 = vld [vmem:[%s2749_s1 + $0x308] sm:$0xff]  ;;  %567 = vmatprep.subr.mxu1 %v263_v25  ;;  %v130_v30 = vld [vmem:[%s2749_s1 + $0x300] sm:$0xff]  ;;  %497 = vmatpush2.msra.mxu0 %v134_v26  ;;  %v88_v25 = vld [vmem:[%s2749_s1 + $0x1b0] sm:$0xff] }
  0x30   :  { %v259_v29 = vld [vmem:[%s2749_s1 + $0x708] sm:$0xff]  ;;  %v258_v31 = vld [vmem:[%s2749_s1 + $0x700] sm:$0xff]  ;;  %568 = vmatpush2.msra.mxu1 %v262_v27  ;;  %498 = vmatprep.subr.mxu0 %v131_v28  ;;  %v85_v27 = vld [vmem:[%s2749_s1 + $0x198] sm:$0xff] }
  0x31   :  { %v127_v32 = vld [vmem:[%s2749_s1 + $0x2e8] sm:$0xff]  ;;  %569 = vmatprep.subr.mxu1 %v259_v29  ;;  %v126_v34 = vld [vmem:[%s2749_s1 + $0x2e0] sm:$0xff]  ;;  %499 = vmatpush2.msra.mxu0 %v130_v30  ;;  %v84_v29 = vld [vmem:[%s2749_s1 + $0x190] sm:$0xff] }
  0x32   :  { %v255_v33 = vld [vmem:[%s2749_s1 + $0x6e8] sm:$0xff]  ;;  %v254_v35 = vld [vmem:[%s2749_s1 + $0x6e0] sm:$0xff]  ;;  %570 = vmatpush2.msra.mxu1 %v258_v31  ;;  %500 = vmatprep.subr.mxu0 %v127_v32  ;;  %v81_v31 = vld [vmem:[%s2749_s1 + $0x178] sm:$0xff] }
  0x33   :  { %v123_v36 = vld [vmem:[%s2749_s1 + $0x2c8] sm:$0xff]  ;;  %571 = vmatprep.subr.mxu1 %v255_v33  ;;  %v122_v38 = vld [vmem:[%s2749_s1 + $0x2c0] sm:$0xff]  ;;  %501 = vmatpush2.msra.mxu0 %v126_v34  ;;  %v80_v33 = vld [vmem:[%s2749_s1 + $0x170] sm:$0xff] }
  0x34   :  { %v251_v37 = vld [vmem:[%s2749_s1 + $0x6c8] sm:$0xff]  ;;  %v250_v39 = vld [vmem:[%s2749_s1 + $0x6c0] sm:$0xff]  ;;  %572 = vmatpush2.msra.mxu1 %v254_v35  ;;  %502 = vmatprep.subr.mxu0 %v123_v36  ;;  %v77_v35 = vld [vmem:[%s2749_s1 + $0x158] sm:$0xff] }
  0x35   :  { %v119_v40 = vld [vmem:[%s2749_s1 + $0x2a8] sm:$0xff]  ;;  %573 = vmatprep.subr.mxu1 %v251_v37  ;;  %v118_v42 = vld [vmem:[%s2749_s1 + $0x2a0] sm:$0xff]  ;;  %503 = vmatpush2.msra.mxu0 %v122_v38  ;;  %v76_v37 = vld [vmem:[%s2749_s1 + $0x150] sm:$0xff] }
  0x36   :  { %v247_v41 = vld [vmem:[%s2749_s1 + $0x6a8] sm:$0xff]  ;;  %v246_v43 = vld [vmem:[%s2749_s1 + $0x6a0] sm:$0xff]  ;;  %574 = vmatpush2.msra.mxu1 %v250_v39  ;;  %504 = vmatprep.subr.mxu0 %v119_v40  ;;  %v73_v39 = vld [vmem:[%s2749_s1 + $0x138] sm:$0xff] }
  0x37   :  { %v115_v44 = vld [vmem:[%s2749_s1 + $0x288] sm:$0xff]  ;;  %575 = vmatprep.subr.mxu1 %v247_v41  ;;  %v114_v46 = vld [vmem:[%s2749_s1 + $0x280] sm:$0xff]  ;;  %505 = vmatpush2.msra.mxu0 %v118_v42  ;;  %v72_v41 = vld [vmem:[%s2749_s1 + $0x130] sm:$0xff] }
  0x38   :  { %v243_v45 = vld [vmem:[%s2749_s1 + $0x688] sm:$0xff]  ;;  %v242_v47 = vld [vmem:[%s2749_s1 + $0x680] sm:$0xff]  ;;  %576 = vmatpush2.msra.mxu1 %v246_v43  ;;  %506 = vmatprep.subr.mxu0 %v115_v44  ;;  %v69_v43 = vld [vmem:[%s2749_s1 + $0x118] sm:$0xff] }
  0x39   :  { %v111_v48 = vld [vmem:[%s2749_s1 + $0x268] sm:$0xff]  ;;  %577 = vmatprep.subr.mxu1 %v243_v45  ;;  %v110_v50 = vld [vmem:[%s2749_s1 + $0x260] sm:$0xff]  ;;  %507 = vmatpush2.msra.mxu0 %v114_v46  ;;  %v68_v45 = vld [vmem:[%s2749_s1 + $0x110] sm:$0xff] }
  0x3a   :  { %v239_v49 = vld [vmem:[%s2749_s1 + $0x668] sm:$0xff]  ;;  %v238_v51 = vld [vmem:[%s2749_s1 + $0x660] sm:$0xff]  ;;  %578 = vmatpush2.msra.mxu1 %v242_v47  ;;  %508 = vmatprep.subr.mxu0 %v111_v48  ;;  %v65_v47 = vld [vmem:[%s2749_s1 + $0xf8] sm:$0xff] }
  0x3b   :  { %v107_v52 = vld [vmem:[%s2749_s1 + $0x248] sm:$0xff]  ;;  %579 = vmatprep.subr.mxu1 %v239_v49  ;;  %v106_v54 = vld [vmem:[%s2749_s1 + $0x240] sm:$0xff]  ;;  %509 = vmatpush2.msra.mxu0 %v110_v50  ;;  %v64_v49 = vld [vmem:[%s2749_s1 + $0xf0] sm:$0xff] }
  0x3c   :  { %v235_v53 = vld [vmem:[%s2749_s1 + $0x648] sm:$0xff]  ;;  %v234_v55 = vld [vmem:[%s2749_s1 + $0x640] sm:$0xff]  ;;  %580 = vmatpush2.msra.mxu1 %v238_v51  ;;  %510 = vmatprep.subr.mxu0 %v107_v52  ;;  %v61_v51 = vld [vmem:[%s2749_s1 + $0xd8] sm:$0xff] }
  0x3d   :  { %v103_v56 = vld [vmem:[%s2749_s1 + $0x228] sm:$0xff]  ;;  %581 = vmatprep.subr.mxu1 %v235_v53  ;;  %v102_v58 = vld [vmem:[%s2749_s1 + $0x220] sm:$0xff]  ;;  %511 = vmatpush2.msra.mxu0 %v106_v54  ;;  %v60_v53 = vld [vmem:[%s2749_s1 + $0xd0] sm:$0xff] }
  0x3e   :  { %v231_v57 = vld [vmem:[%s2749_s1 + $0x628] sm:$0xff]  ;;  %v230_v59 = vld [vmem:[%s2749_s1 + $0x620] sm:$0xff]  ;;  %582 = vmatpush2.msra.mxu1 %v234_v55  ;;  %512 = vmatprep.subr.mxu0 %v103_v56  ;;  %v57_v55 = vld [vmem:[%s2749_s1 + $0xb8] sm:$0xff] }
  0x3f   :  { %v99_v60 = vld [vmem:[%s2749_s1 + $0x208] sm:$0xff]  ;;  %583 = vmatprep.subr.mxu1 %v231_v57  ;;  %v98_v62 = vld [vmem:[%s2749_s1 + $0x200] sm:$0xff]  ;;  %513 = vmatpush2.msra.mxu0 %v102_v58  ;;  %v56_v57 = vld [vmem:[%s2749_s1 + $0xb0] sm:$0xff] }
  0x40   :  { %v227_v61 = vld [vmem:[%s2749_s1 + $0x608] sm:$0xff]  ;;  %584 = vmatpush2.msra.mxu1 %v230_v59  ;;  %v226_v0 = vld [vmem:[%s2749_s1 + $0x600] sm:$0xff]  ;;  %514 = vmatprep.subr.mxu0 %v99_v60  ;;  %v53_v59 = vld [vmem:[%s2749_s1 + $0x98] sm:$0xff] }
  0x41   :  { %v1723_v63 = vld [vmem:[%s2750_s0 + $0x8] sm:$0xff]  ;;  %585 = vmatprep.subr.mxu1 %v227_v61  ;;  %v1734_v2 = vld [vmem:[%s2750_s0] sm:$0xff]  ;;  %515 = vmatpush2.msra.mxu0 %v98_v62  ;;  %v52_v61 = vld [vmem:[%s2749_s1 + $0x90] sm:$0xff] }
  0x42   :  { %516 = vmatprep.mubr.f32.mxu0 %v1723_v63  ;;  %v351_v4 = vld [vmem:[%s2749_s1 + $0x9e8] sm:$0xff]  ;;  %586 = vmatpush2.msra.mxu1 %v226_v0  ;;  %v350_v6 = vld [vmem:[%s2749_s1 + $0x9e0] sm:$0xff]  ;;  %v49_v0 = vld [vmem:[%s2749_s1 + $0x78] sm:$0xff] }
  0x43   :  { %v423_v5 = vld [vmem:[%s2749_s1 + $0xc28] sm:$0xff]  ;;  %587 = vmatprep.mubr.f32.mxu1 %v30_v1  ;;  %v422_v7 = vld [vmem:[%s2749_s1 + $0xc20] sm:$0xff]  ;;  %517 = vmatmul.mubr.f32.vlgmr.msra.gmra.mxu0 %v1734_v2 }
  0x44   :  { %588 = vmatmul.mubr.f32.vlgmr.msra.gmra.mxu1 %v29_v3  ;;  %v347_v8 = vld [vmem:[%s2749_s1 + $0x9c8] sm:$0xff]  ;;  %594 = vmatprep.subr.mxu0 %v351_v4  ;;  %v346_v10 = vld [vmem:[%s2749_s1 + $0x9c0] sm:$0xff]  ;;  %v48_v3 = vld [vmem:[%s2749_s1 + $0x70] sm:$0xff] }
  0x45   :  { %v419_v9 = vld [vmem:[%s2749_s1 + $0xc08] sm:$0xff]  ;;  %693 = vmatprep.subr.mxu1 %v423_v5  ;;  %v418_v11 = vld [vmem:[%s2749_s1 + $0xc00] sm:$0xff]  ;;  %595 = vmatpush1.msra.mxu0 %v350_v6  ;;  %v45_v5 = vld [vmem:[%s2749_s1 + $0x58] sm:$0xff] }
  0x46   :  { %694 = vmatpush1.msra.mxu1 %v422_v7  ;;  %v343_v12 = vld [vmem:[%s2749_s1 + $0x9a8] sm:$0xff]  ;;  %596 = vmatprep.subr.mxu0 %v347_v8  ;;  %v342_v15 = vld [vmem:[%s2749_s1 + $0x9a0] sm:$0xff]  ;;  %v44_v7 = vld [vmem:[%s2749_s1 + $0x50] sm:$0xff] }
  0x47   :  { %695 = vmatprep.subr.mxu1 %v419_v9  ;;  %597 = vmatpush1.msra.mxu0 %v346_v10  ;;  %v339_v18 = vld [vmem:[%s2749_s1 + $0x988] sm:$0xff]  ;;  %v338_v20 = vld [vmem:[%s2749_s1 + $0x980] sm:$0xff]  ;;  %v41_v9 = vld [vmem:[%s2749_s1 + $0x38] sm:$0xff] }
  0x48   :  { %696 = vmatpush1.msra.mxu1 %v418_v11  ;;  %729 = vmatprep.mubr.f32.mxu1 %v1298_v17  ;;  %v335_v22 = vld [vmem:[%s2749_s1 + $0x968] sm:$0xff]  ;;  %v334_v24 = vld [vmem:[%s2749_s1 + $0x960] sm:$0xff]  ;;  %v40_v11 = vld [vmem:[%s2749_s1 + $0x30] sm:$0xff] }
  0x49   :  { %598 = vmatprep.subr.mxu0 %v343_v12  ;;  %1254 = vmatmul.mubr.msk.f32.vlgmr.msra.gmra.mxu1 %vm448_vm0, %v33_v13  ;;  %v331_v26 = vld [vmem:[%s2749_s1 + $0x948] sm:$0xff]  ;;  %v330_v28 = vld [vmem:[%s2749_s1 + $0x940] sm:$0xff]  ;;  %v37_v13 = vld [vmem:[%s2749_s1 + $0x18] sm:$0xff] }
  0x4a   :  { %736 = vmatprep.subr.mxu1 %v97_v14  ;;  %599 = vmatpush1.msra.mxu0 %v342_v15  ;;  %v327_v30 = vld [vmem:[%s2749_s1 + $0x928] sm:$0xff]  ;;  %v326_v32 = vld [vmem:[%s2749_s1 + $0x920] sm:$0xff]  ;;  %v36_v15 = vld [vmem:[%s2749_s1 + $0x10] sm:$0xff] }
  0x4b   :  { %737 = vmatpush1.msra.mxu1 %v96_v16  ;;  %600 = vmatprep.subr.mxu0 %v339_v18  ;;  %v323_v34 = vld [vmem:[%s2749_s1 + $0x908] sm:$0xff]  ;;  %v322_v36 = vld [vmem:[%s2749_s1 + $0x900] sm:$0xff]  ;;  %v161_v18 = vld [vmem:[%s2749_s1 + $0x3f8] sm:$0xff] }
  0x4c   :  { %738 = vmatprep.subr.mxu1 %v93_v19  ;;  %601 = vmatpush1.msra.mxu0 %v338_v20  ;;  %v319_v38 = vld [vmem:[%s2749_s1 + $0x8e8] sm:$0xff]  ;;  %v318_v40 = vld [vmem:[%s2749_s1 + $0x8e0] sm:$0xff]  ;;  %v160_v20 = vld [vmem:[%s2749_s1 + $0x3f0] sm:$0xff] }
  0x4d   :  { %739 = vmatpush1.msra.mxu1 %v92_v21  ;;  %602 = vmatprep.subr.mxu0 %v335_v22  ;;  %v315_v42 = vld [vmem:[%s2749_s1 + $0x8c8] sm:$0xff]  ;;  %v314_v44 = vld [vmem:[%s2749_s1 + $0x8c0] sm:$0xff]  ;;  %v157_v22 = vld [vmem:[%s2749_s1 + $0x3d8] sm:$0xff] }
  0x4e   :  { %740 = vmatprep.subr.mxu1 %v89_v23  ;;  %603 = vmatpush1.msra.mxu0 %v334_v24  ;;  %v311_v46 = vld [vmem:[%s2749_s1 + $0x8a8] sm:$0xff]  ;;  %v310_v48 = vld [vmem:[%s2749_s1 + $0x8a0] sm:$0xff]  ;;  %v156_v24 = vld [vmem:[%s2749_s1 + $0x3d0] sm:$0xff] }
  0x4f   :  { %741 = vmatpush1.msra.mxu1 %v88_v25  ;;  %604 = vmatprep.subr.mxu0 %v331_v26  ;;  %v307_v50 = vld [vmem:[%s2749_s1 + $0x888] sm:$0xff]  ;;  %v306_v52 = vld [vmem:[%s2749_s1 + $0x880] sm:$0xff]  ;;  %v153_v26 = vld [vmem:[%s2749_s1 + $0x3b8] sm:$0xff] }
  0x50   :  { %742 = vmatprep.subr.mxu1 %v85_v27  ;;  %605 = vmatpush1.msra.mxu0 %v330_v28  ;;  %v303_v54 = vld [vmem:[%s2749_s1 + $0x868] sm:$0xff]  ;;  %v302_v56 = vld [vmem:[%s2749_s1 + $0x860] sm:$0xff]  ;;  %v152_v28 = vld [vmem:[%s2749_s1 + $0x3b0] sm:$0xff] }
  0x51   :  { %743 = vmatpush1.msra.mxu1 %v84_v29  ;;  %606 = vmatprep.subr.mxu0 %v327_v30  ;;  %v299_v58 = vld [vmem:[%s2749_s1 + $0x848] sm:$0xff]  ;;  %v298_v60 = vld [vmem:[%s2749_s1 + $0x840] sm:$0xff]  ;;  %v149_v30 = vld [vmem:[%s2749_s1 + $0x398] sm:$0xff] }
  0x52   :  { %744 = vmatprep.subr.mxu1 %v81_v31  ;;  %607 = vmatpush1.msra.mxu0 %v326_v32  ;;  %v295_v62 = vld [vmem:[%s2749_s1 + $0x828] sm:$0xff]  ;;  %v294_v1 = vld [vmem:[%s2749_s1 + $0x820] sm:$0xff]  ;;  %v148_v32 = vld [vmem:[%s2749_s1 + $0x390] sm:$0xff] }
  0x53   :  { %745 = vmatpush1.msra.mxu1 %v80_v33  ;;  %608 = vmatprep.subr.mxu0 %v323_v34  ;;  %v291_v4 = vld [vmem:[%s2749_s1 + $0x808] sm:$0xff]  ;;  %v290_v6 = vld [vmem:[%s2749_s1 + $0x800] sm:$0xff]  ;;  %v145_v34 = vld [vmem:[%s2749_s1 + $0x378] sm:$0xff] }
  0x54   :  { %746 = vmatprep.subr.mxu1 %v77_v35  ;;  %609 = vmatpush1.msra.mxu0 %v322_v36  ;;  %v415_v8 = vld [vmem:[%s2749_s1 + $0xbe8] sm:$0xff]  ;;  %v414_v10 = vld [vmem:[%s2749_s1 + $0xbe0] sm:$0xff]  ;;  %v144_v36 = vld [vmem:[%s2749_s1 + $0x370] sm:$0xff] }
  0x55   :  { %747 = vmatpush1.msra.mxu1 %v76_v37  ;;  %610 = vmatprep.subr.mxu0 %v319_v38  ;;  %v411_v12 = vld [vmem:[%s2749_s1 + $0xbc8] sm:$0xff]  ;;  %v410_v14 = vld [vmem:[%s2749_s1 + $0xbc0] sm:$0xff]  ;;  %v141_v38 = vld [vmem:[%s2749_s1 + $0x358] sm:$0xff] }
  0x56   :  { %748 = vmatprep.subr.mxu1 %v73_v39  ;;  %611 = vmatpush1.msra.mxu0 %v318_v40  ;;  %v407_v16 = vld [vmem:[%s2749_s1 + $0xba8] sm:$0xff]  ;;  %v406_v19 = vld [vmem:[%s2749_s1 + $0xba0] sm:$0xff]  ;;  %v140_v40 = vld [vmem:[%s2749_s1 + $0x350] sm:$0xff] }
  0x57   :  { %749 = vmatpush1.msra.mxu1 %v72_v41  ;;  %612 = vmatprep.subr.mxu0 %v315_v42  ;;  %v403_v21 = vld [vmem:[%s2749_s1 + $0xb88] sm:$0xff]  ;;  %v402_v23 = vld [vmem:[%s2749_s1 + $0xb80] sm:$0xff]  ;;  %v137_v42 = vld [vmem:[%s2749_s1 + $0x338] sm:$0xff] }
  0x58   :  { %750 = vmatprep.subr.mxu1 %v69_v43  ;;  %613 = vmatpush1.msra.mxu0 %v314_v44  ;;  %v399_v25 = vld [vmem:[%s2749_s1 + $0xb68] sm:$0xff]  ;;  %v398_v27 = vld [vmem:[%s2749_s1 + $0xb60] sm:$0xff]  ;;  %v136_v44 = vld [vmem:[%s2749_s1 + $0x330] sm:$0xff] }
  0x59   :  { %751 = vmatpush1.msra.mxu1 %v68_v45  ;;  %614 = vmatprep.subr.mxu0 %v311_v46  ;;  %v395_v29 = vld [vmem:[%s2749_s1 + $0xb48] sm:$0xff]  ;;  %v394_v31 = vld [vmem:[%s2749_s1 + $0xb40] sm:$0xff]  ;;  %v133_v46 = vld [vmem:[%s2749_s1 + $0x318] sm:$0xff] }
  0x5a   :  { %752 = vmatprep.subr.mxu1 %v65_v47  ;;  %615 = vmatpush1.msra.mxu0 %v310_v48  ;;  %v391_v33 = vld [vmem:[%s2749_s1 + $0xb28] sm:$0xff]  ;;  %v390_v35 = vld [vmem:[%s2749_s1 + $0xb20] sm:$0xff]  ;;  %v132_v48 = vld [vmem:[%s2749_s1 + $0x310] sm:$0xff] }
  0x5b   :  { %753 = vmatpush1.msra.mxu1 %v64_v49  ;;  %616 = vmatprep.subr.mxu0 %v307_v50  ;;  %v387_v37 = vld [vmem:[%s2749_s1 + $0xb08] sm:$0xff]  ;;  %v386_v39 = vld [vmem:[%s2749_s1 + $0xb00] sm:$0xff]  ;;  %v129_v50 = vld [vmem:[%s2749_s1 + $0x2f8] sm:$0xff] }
  0x5c   :  { %754 = vmatprep.subr.mxu1 %v61_v51  ;;  %617 = vmatpush1.msra.mxu0 %v306_v52  ;;  %v383_v41 = vld [vmem:[%s2749_s1 + $0xae8] sm:$0xff]  ;;  %v382_v43 = vld [vmem:[%s2749_s1 + $0xae0] sm:$0xff]  ;;  %v128_v52 = vld [vmem:[%s2749_s1 + $0x2f0] sm:$0xff] }
  0x5d   :  { %755 = vmatpush1.msra.mxu1 %v60_v53  ;;  %618 = vmatprep.subr.mxu0 %v303_v54  ;;  %v379_v45 = vld [vmem:[%s2749_s1 + $0xac8] sm:$0xff]  ;;  %v378_v47 = vld [vmem:[%s2749_s1 + $0xac0] sm:$0xff]  ;;  %v125_v54 = vld [vmem:[%s2749_s1 + $0x2d8] sm:$0xff] }
  0x5e   :  { %756 = vmatprep.subr.mxu1 %v57_v55  ;;  %619 = vmatpush1.msra.mxu0 %v302_v56  ;;  %v375_v49 = vld [vmem:[%s2749_s1 + $0xaa8] sm:$0xff]  ;;  %v374_v51 = vld [vmem:[%s2749_s1 + $0xaa0] sm:$0xff]  ;;  %v124_v56 = vld [vmem:[%s2749_s1 + $0x2d0] sm:$0xff] }
  0x5f   :  { %757 = vmatpush1.msra.mxu1 %v56_v57  ;;  %620 = vmatprep.subr.mxu0 %v299_v58  ;;  %v371_v53 = vld [vmem:[%s2749_s1 + $0xa88] sm:$0xff]  ;;  %v370_v55 = vld [vmem:[%s2749_s1 + $0xa80] sm:$0xff]  ;;  %v121_v58 = vld [vmem:[%s2749_s1 + $0x2b8] sm:$0xff] }
  0x60   :  { %758 = vmatprep.subr.mxu1 %v53_v59  ;;  %621 = vmatpush1.msra.mxu0 %v298_v60  ;;  %v367_v57 = vld [vmem:[%s2749_s1 + $0xa68] sm:$0xff]  ;;  %v366_v59 = vld [vmem:[%s2749_s1 + $0xa60] sm:$0xff]  ;;  %v120_v60 = vld [vmem:[%s2749_s1 + $0x2b0] sm:$0xff] }
  0x61   :  { %759 = vmatpush1.msra.mxu1 %v52_v61  ;;  %622 = vmatprep.subr.mxu0 %v295_v62  ;;  %v363_v61 = vld [vmem:[%s2749_s1 + $0xa48] sm:$0xff]  ;;  %v117_v62 = vld [vmem:[%s2749_s1 + $0x298] sm:$0xff] }
  0x62   :  { %760 = vmatprep.subr.mxu1 %v49_v0  ;;  %623 = vmatpush1.msra.mxu0 %v294_v1  ;;  %v362_v0 = vld [vmem:[%s2749_s1 + $0xa40] sm:$0xff]  ;;  %v116_v1 = vld [vmem:[%s2749_s1 + $0x290] sm:$0xff] }
  0x63   :  { %761 = vmatpush1.msra.mxu1 %v48_v3  ;;  %624 = vmatprep.subr.mxu0 %v291_v4  ;;  %v359_v3 = vld [vmem:[%s2749_s1 + $0xa28] sm:$0xff]  ;;  %v113_v4 = vld [vmem:[%s2749_s1 + $0x278] sm:$0xff] }
  0x64   :  { %762 = vmatprep.subr.mxu1 %v45_v5  ;;  %625 = vmatpush1.msra.mxu0 %v290_v6  ;;  %v358_v5 = vld [vmem:[%s2749_s1 + $0xa20] sm:$0xff]  ;;  %v112_v6 = vld [vmem:[%s2749_s1 + $0x270] sm:$0xff] }
  0x65   :  { %763 = vmatpush1.msra.mxu1 %v44_v7  ;;  %626 = vmatprep.subr.mxu0 %v415_v8  ;;  %v355_v7 = vld [vmem:[%s2749_s1 + $0xa08] sm:$0xff]  ;;  %v109_v8 = vld [vmem:[%s2749_s1 + $0x258] sm:$0xff] }
  0x66   :  { %764 = vmatprep.subr.mxu1 %v41_v9  ;;  %627 = vmatpush2.msra.mxu0 %v414_v10  ;;  %v354_v9 = vld [vmem:[%s2749_s1 + $0xa00] sm:$0xff]  ;;  %v2130_v10 = vld [vmem:[%s2750_s0 + $0x28] sm:$0xff] }
  0x67   :  { %765 = vmatpush1.msra.mxu1 %v40_v11  ;;  %628 = vmatprep.subr.mxu0 %v411_v12  ;;  %v108_v11 = vld [vmem:[%s2749_s1 + $0x250] sm:$0xff]  ;;  %v2138_v12 = vld [vmem:[%s2750_s0 + $0x20] sm:$0xff] }
  0x68   :  { %766 = vmatprep.subr.mxu1 %v37_v13  ;;  %629 = vmatpush2.msra.mxu0 %v410_v14  ;;  %v105_v13 = vld [vmem:[%s2749_s1 + $0x238] sm:$0xff] }
  0x69   :  { %767 = vmatpush1.msra.mxu1 %v36_v15  ;;  %630 = vmatprep.subr.mxu0 %v407_v16  ;;  %v225_v14 = vld [vmem:[%s2749_s1 + $0x5f8] sm:$0xff]  ;;  %v104_v15 = vld [vmem:[%s2749_s1 + $0x230] sm:$0xff] }
  0x6a   :  { %768 = vmatprep.subr.mxu1 %v161_v18  ;;  %631 = vmatpush2.msra.mxu0 %v406_v19  ;;  %v224_v16 = vld [vmem:[%s2749_s1 + $0x5f0] sm:$0xff]  ;;  %v101_v18 = vld [vmem:[%s2749_s1 + $0x218] sm:$0xff] }
  0x6b   :  { %769 = vmatpush2.msra.mxu1 %v160_v20  ;;  %632 = vmatprep.subr.mxu0 %v403_v21  ;;  %v221_v19 = vld [vmem:[%s2749_s1 + $0x5d8] sm:$0xff]  ;;  %v100_v20 = vld [vmem:[%s2749_s1 + $0x210] sm:$0xff] }
  0x6c   :  { %770 = vmatprep.subr.mxu1 %v157_v22  ;;  %633 = vmatpush2.msra.mxu0 %v402_v23  ;;  %v220_v21 = vld [vmem:[%s2749_s1 + $0x5d0] sm:$0xff]  ;;  %v217_v22 = vld [vmem:[%s2749_s1 + $0x5b8] sm:$0xff] }
  0x6d   :  { %771 = vmatpush2.msra.mxu1 %v156_v24  ;;  %634 = vmatprep.subr.mxu0 %v399_v25  ;;  %v353_v23 = vld [vmem:[%s2749_s1 + $0x9f8] sm:$0xff]  ;;  %v216_v24 = vld [vmem:[%s2749_s1 + $0x5b0] sm:$0xff] }
  0x6e   :  { %772 = vmatprep.subr.mxu1 %v153_v26  ;;  %635 = vmatpush2.msra.mxu0 %v398_v27  ;;  %v352_v25 = vld [vmem:[%s2749_s1 + $0x9f0] sm:$0xff]  ;;  %v213_v26 = vld [vmem:[%s2749_s1 + $0x598] sm:$0xff] }
  0x6f   :  { %773 = vmatpush2.msra.mxu1 %v152_v28  ;;  %636 = vmatprep.subr.mxu0 %v395_v29  ;;  %v349_v27 = vld [vmem:[%s2749_s1 + $0x9d8] sm:$0xff]  ;;  %v348_v28 = vld [vmem:[%s2749_s1 + $0x9d0] sm:$0xff] }
  0x70   :  { %774 = vmatprep.subr.mxu1 %v149_v30  ;;  %637 = vmatpush2.msra.mxu0 %v394_v31  ;;  %v345_v29 = vld [vmem:[%s2749_s1 + $0x9b8] sm:$0xff]  ;;  %v208_v30 = vld [vmem:[%s2749_s1 + $0x570] sm:$0xff] }
  0x71   :  { %775 = vmatpush2.msra.mxu1 %v148_v32  ;;  %638 = vmatprep.subr.mxu0 %v391_v33  ;;  %v344_v31 = vld [vmem:[%s2749_s1 + $0x9b0] sm:$0xff]  ;;  %v205_v32 = vld [vmem:[%s2749_s1 + $0x558] sm:$0xff] }
  0x72   :  { %776 = vmatprep.subr.mxu1 %v145_v34  ;;  %639 = vmatpush2.msra.mxu0 %v390_v35  ;;  %v341_v33 = vld [vmem:[%s2749_s1 + $0x998] sm:$0xff]  ;;  %v204_v34 = vld [vmem:[%s2749_s1 + $0x550] sm:$0xff] }
  0x73   :  { %777 = vmatpush2.msra.mxu1 %v144_v36  ;;  %640 = vmatprep.subr.mxu0 %v387_v37  ;;  %v340_v35 = vld [vmem:[%s2749_s1 + $0x990] sm:$0xff]  ;;  %v201_v36 = vld [vmem:[%s2749_s1 + $0x538] sm:$0xff] }
  0x74   :  { %778 = vmatprep.subr.mxu1 %v141_v38  ;;  %641 = vmatpush2.msra.mxu0 %v386_v39  ;;  %v337_v37 = vld [vmem:[%s2749_s1 + $0x978] sm:$0xff]  ;;  %v200_v38 = vld [vmem:[%s2749_s1 + $0x530] sm:$0xff] }
  0x75   :  { %779 = vmatpush2.msra.mxu1 %v140_v40  ;;  %642 = vmatprep.subr.mxu0 %v383_v41  ;;  %v336_v39 = vld [vmem:[%s2749_s1 + $0x970] sm:$0xff]  ;;  %v197_v40 = vld [vmem:[%s2749_s1 + $0x518] sm:$0xff] }
  0x76   :  { %780 = vmatprep.subr.mxu1 %v137_v42  ;;  %643 = vmatpush2.msra.mxu0 %v382_v43  ;;  %v333_v41 = vld [vmem:[%s2749_s1 + $0x958] sm:$0xff]  ;;  %v196_v42 = vld [vmem:[%s2749_s1 + $0x510] sm:$0xff] }
  0x77   :  { %781 = vmatpush2.msra.mxu1 %v136_v44  ;;  %644 = vmatprep.subr.mxu0 %v379_v45  ;;  %v332_v43 = vld [vmem:[%s2749_s1 + $0x950] sm:$0xff]  ;;  %v193_v44 = vld [vmem:[%s2749_s1 + $0x4f8] sm:$0xff] }
  0x78   :  { %782 = vmatprep.subr.mxu1 %v133_v46  ;;  %645 = vmatpush2.msra.mxu0 %v378_v47  ;;  %v329_v45 = vld [vmem:[%s2749_s1 + $0x938] sm:$0xff]  ;;  %v192_v46 = vld [vmem:[%s2749_s1 + $0x4f0] sm:$0xff] }
  0x79   :  { %783 = vmatpush2.msra.mxu1 %v132_v48  ;;  %646 = vmatprep.subr.mxu0 %v375_v49  ;;  %v328_v47 = vld [vmem:[%s2749_s1 + $0x930] sm:$0xff]  ;;  %v189_v48 = vld [vmem:[%s2749_s1 + $0x4d8] sm:$0xff] }
  0x7a   :  { %784 = vmatprep.subr.mxu1 %v129_v50  ;;  %647 = vmatpush2.msra.mxu0 %v374_v51  ;;  %v325_v49 = vld [vmem:[%s2749_s1 + $0x918] sm:$0xff]  ;;  %v188_v50 = vld [vmem:[%s2749_s1 + $0x4d0] sm:$0xff] }
  0x7b   :  { %785 = vmatpush2.msra.mxu1 %v128_v52  ;;  %648 = vmatprep.subr.mxu0 %v371_v53  ;;  %v324_v51 = vld [vmem:[%s2749_s1 + $0x910] sm:$0xff]  ;;  %v185_v52 = vld [vmem:[%s2749_s1 + $0x4b8] sm:$0xff] }
  0x7c   :  { %786 = vmatprep.subr.mxu1 %v125_v54  ;;  %649 = vmatpush2.msra.mxu0 %v370_v55  ;;  %v321_v53 = vld [vmem:[%s2749_s1 + $0x8f8] sm:$0xff]  ;;  %v184_v54 = vld [vmem:[%s2749_s1 + $0x4b0] sm:$0xff] }
  0x7d   :  { %787 = vmatpush2.msra.mxu1 %v124_v56  ;;  %650 = vmatprep.subr.mxu0 %v367_v57  ;;  %v320_v55 = vld [vmem:[%s2749_s1 + $0x8f0] sm:$0xff]  ;;  %v181_v56 = vld [vmem:[%s2749_s1 + $0x498] sm:$0xff] }
  0x7e   :  { %788 = vmatprep.subr.mxu1 %v121_v58  ;;  %651 = vmatpush2.msra.mxu0 %v366_v59  ;;  %v317_v57 = vld [vmem:[%s2749_s1 + $0x8d8] sm:$0xff]  ;;  %v180_v58 = vld [vmem:[%s2749_s1 + $0x490] sm:$0xff] }
  0x7f   :  { %789 = vmatpush2.msra.mxu1 %v120_v60  ;;  %652 = vmatprep.subr.mxu0 %v363_v61  ;;  %v316_v59 = vld [vmem:[%s2749_s1 + $0x8d0] sm:$0xff]  ;;  %v177_v60 = vld [vmem:[%s2749_s1 + $0x478] sm:$0xff] }
  0x80   :  { %790 = vmatprep.subr.mxu1 %v117_v62  ;;  %653 = vmatpush2.msra.mxu0 %v362_v0  ;;  %v313_v61 = vld [vmem:[%s2749_s1 + $0x8b8] sm:$0xff]  ;;  %v176_v62 = vld [vmem:[%s2749_s1 + $0x470] sm:$0xff] }
  0x81   :  { %791 = vmatpush2.msra.mxu1 %v116_v1  ;;  %654 = vmatprep.subr.mxu0 %v359_v3  ;;  %v312_v0 = vld [vmem:[%s2749_s1 + $0x8b0] sm:$0xff]  ;;  %v173_v1 = vld [vmem:[%s2749_s1 + $0x458] sm:$0xff] }
  0x82   :  { %792 = vmatprep.subr.mxu1 %v113_v4  ;;  %655 = vmatpush2.msra.mxu0 %v358_v5  ;;  %v309_v3 = vld [vmem:[%s2749_s1 + $0x898] sm:$0xff]  ;;  %v172_v4 = vld [vmem:[%s2749_s1 + $0x450] sm:$0xff] }
  0x83   :  { %793 = vmatpush2.msra.mxu1 %v112_v6  ;;  %656 = vmatprep.subr.mxu0 %v355_v7  ;;  %v308_v5 = vld [vmem:[%s2749_s1 + $0x890] sm:$0xff]  ;;  %v169_v6 = vld [vmem:[%s2749_s1 + $0x438] sm:$0xff] }
  0x84   :  { %794 = vmatprep.subr.mxu1 %v109_v8  ;;  %657 = vmatpush2.msra.mxu0 %v354_v9  ;;  %v305_v7 = vld [vmem:[%s2749_s1 + $0x878] sm:$0xff]  ;;  %v168_v8 = vld [vmem:[%s2749_s1 + $0x430] sm:$0xff] }
  0x85   :  { %658 = vmatprep.mubr.f32.mxu0 %v2130_v10  ;;  %795 = vmatpush2.msra.mxu1 %v108_v11  ;;  %v304_v9 = vld [vmem:[%s2749_s1 + $0x870] sm:$0xff]  ;;  %v165_v11 = vld [vmem:[%s2749_s1 + $0x418] sm:$0xff] }
  0x86   :  { %659 = vmatmul.mubr.f32.vlgmr.msra.gmra.mxu0 %v2138_v12  ;;  %796 = vmatprep.subr.mxu1 %v105_v13  ;;  %v301_v13 = vld [vmem:[%s2749_s1 + $0x858] sm:$0xff] }
  0x87   :  { %807 = vmatprep.subr.mxu0 %v225_v14  ;;  %797 = vmatpush2.msra.mxu1 %v104_v15  ;;  %v164_v14 = vld [vmem:[%s2749_s1 + $0x410] sm:$0xff] }
  0x88   :  { %808 = vmatpush1.msra.mxu0 %v224_v16  ;;  %798 = vmatprep.subr.mxu1 %v101_v18  ;;  %v300_v15 = vld [vmem:[%s2749_s1 + $0x850] sm:$0xff]  ;;  %v289_v16 = vld [vmem:[%s2749_s1 + $0x7f8] sm:$0xff] }
  0x89   :  { %809 = vmatprep.subr.mxu0 %v221_v19  ;;  %799 = vmatpush2.msra.mxu1 %v100_v20  ;;  %v297_v18 = vld [vmem:[%s2749_s1 + $0x838] sm:$0xff]  ;;  %v288_v19 = vld [vmem:[%s2749_s1 + $0x7f0] sm:$0xff] }
  0x8a   :  { %800 = vmatprep.mubr.f32.mxu1 %v1723_v63  ;;  %810 = vmatpush1.msra.mxu0 %v220_v21  ;;  %v212_v63 = vld [vmem:[%s2749_s1 + $0x590] sm:$0xff]  ;;  %v285_v21 = vld [vmem:[%s2749_s1 + $0x7d8] sm:$0xff] }
  0x8b   :  { %801 = vmatmul.mubr.f32.vlgmr.msra.gmra.mxu1 %v1734_v2  ;;  %811 = vmatprep.subr.mxu0 %v217_v22  ;;  %v209_v2 = vld [vmem:[%s2749_s1 + $0x578] sm:$0xff]  ;;  %v296_v20 = vld [vmem:[%s2749_s1 + $0x830] sm:$0xff] }
  0x8c   :  { %878 = vmatprep.subr.mxu1 %v353_v23  ;;  %812 = vmatpush1.msra.mxu0 %v216_v24  ;;  %v293_v22 = vld [vmem:[%s2749_s1 + $0x818] sm:$0xff]  ;;  %v284_v23 = vld [vmem:[%s2749_s1 + $0x7d0] sm:$0xff] }
  0x8d   :  { %879 = vmatpush1.msra.mxu1 %v352_v25  ;;  %813 = vmatprep.subr.mxu0 %v213_v26  ;;  %v292_v24 = vld [vmem:[%s2749_s1 + $0x810] sm:$0xff]  ;;  %v281_v25 = vld [vmem:[%s2749_s1 + $0x7b8] sm:$0xff] }
  0x8e   :  { %880 = vmatprep.subr.mxu1 %v349_v27  ;;  %814 = vmatpush1.msra.mxu0 %v212_v63  ;;  %v417_v26 = vld [vmem:[%s2749_s1 + $0xbf8] sm:$0xff]  ;;  %v280_v27 = vld [vmem:[%s2749_s1 + $0x7b0] sm:$0xff] }
  0x8f   :  { %881 = vmatpush1.msra.mxu1 %v348_v28  ;;  %815 = vmatprep.subr.mxu0 %v209_v2  ;;  %v416_v63 = vld [vmem:[%s2749_s1 + $0xbf0] sm:$0xff]  ;;  %v277_v28 = vld [vmem:[%s2749_s1 + $0x798] sm:$0xff] }
  0x90   :  { %882 = vmatprep.subr.mxu1 %v345_v29  ;;  %816 = vmatpush1.msra.mxu0 %v208_v30  ;;  %v413_v2 = vld [vmem:[%s2749_s1 + $0xbd8] sm:$0xff]  ;;  %v276_v29 = vld [vmem:[%s2749_s1 + $0x790] sm:$0xff] }
  0x91   :  { %883 = vmatpush1.msra.mxu1 %v344_v31  ;;  %817 = vmatprep.subr.mxu0 %v205_v32  ;;  %v412_v30 = vld [vmem:[%s2749_s1 + $0xbd0] sm:$0xff]  ;;  %v273_v31 = vld [vmem:[%s2749_s1 + $0x778] sm:$0xff] }
  0x92   :  { %884 = vmatprep.subr.mxu1 %v341_v33  ;;  %818 = vmatpush1.msra.mxu0 %v204_v34  ;;  %v409_v32 = vld [vmem:[%s2749_s1 + $0xbb8] sm:$0xff]  ;;  %v272_v33 = vld [vmem:[%s2749_s1 + $0x770] sm:$0xff] }
  0x93   :  { %885 = vmatpush1.msra.mxu1 %v340_v35  ;;  %819 = vmatprep.subr.mxu0 %v201_v36  ;;  %v408_v34 = vld [vmem:[%s2749_s1 + $0xbb0] sm:$0xff]  ;;  %v269_v35 = vld [vmem:[%s2749_s1 + $0x758] sm:$0xff] }
  0x94   :  { %886 = vmatprep.subr.mxu1 %v337_v37  ;;  %820 = vmatpush1.msra.mxu0 %v200_v38  ;;  %v405_v36 = vld [vmem:[%s2749_s1 + $0xb98] sm:$0xff]  ;;  %v268_v37 = vld [vmem:[%s2749_s1 + $0x750] sm:$0xff] }
  0x95   :  { %887 = vmatpush1.msra.mxu1 %v336_v39  ;;  %821 = vmatprep.subr.mxu0 %v197_v40  ;;  %v404_v38 = vld [vmem:[%s2749_s1 + $0xb90] sm:$0xff]  ;;  %v265_v39 = vld [vmem:[%s2749_s1 + $0x738] sm:$0xff] }
  0x96   :  { %888 = vmatprep.subr.mxu1 %v333_v41  ;;  %822 = vmatpush1.msra.mxu0 %v196_v42  ;;  %v401_v40 = vld [vmem:[%s2749_s1 + $0xb78] sm:$0xff]  ;;  %v264_v41 = vld [vmem:[%s2749_s1 + $0x730] sm:$0xff] }
  0x97   :  { %889 = vmatpush1.msra.mxu1 %v332_v43  ;;  %823 = vmatprep.subr.mxu0 %v193_v44  ;;  %v400_v42 = vld [vmem:[%s2749_s1 + $0xb70] sm:$0xff]  ;;  %v261_v43 = vld [vmem:[%s2749_s1 + $0x718] sm:$0xff] }
  0x98   :  { %890 = vmatprep.subr.mxu1 %v329_v45  ;;  %824 = vmatpush1.msra.mxu0 %v192_v46  ;;  %v397_v44 = vld [vmem:[%s2749_s1 + $0xb58] sm:$0xff]  ;;  %v260_v45 = vld [vmem:[%s2749_s1 + $0x710] sm:$0xff] }
  0x99   :  { %891 = vmatpush1.msra.mxu1 %v328_v47  ;;  %825 = vmatprep.subr.mxu0 %v189_v48  ;;  %v396_v46 = vld [vmem:[%s2749_s1 + $0xb50] sm:$0xff]  ;;  %v257_v47 = vld [vmem:[%s2749_s1 + $0x6f8] sm:$0xff] }
  0x9a   :  { %892 = vmatprep.subr.mxu1 %v325_v49  ;;  %826 = vmatpush1.msra.mxu0 %v188_v50  ;;  %v393_v48 = vld [vmem:[%s2749_s1 + $0xb38] sm:$0xff]  ;;  %v256_v49 = vld [vmem:[%s2749_s1 + $0x6f0] sm:$0xff] }
  0x9b   :  { %893 = vmatpush1.msra.mxu1 %v324_v51  ;;  %827 = vmatprep.subr.mxu0 %v185_v52  ;;  %v392_v50 = vld [vmem:[%s2749_s1 + $0xb30] sm:$0xff]  ;;  %v253_v51 = vld [vmem:[%s2749_s1 + $0x6d8] sm:$0xff] }
  0x9c   :  { %894 = vmatprep.subr.mxu1 %v321_v53  ;;  %828 = vmatpush1.msra.mxu0 %v184_v54  ;;  %v389_v52 = vld [vmem:[%s2749_s1 + $0xb18] sm:$0xff]  ;;  %v252_v53 = vld [vmem:[%s2749_s1 + $0x6d0] sm:$0xff] }
  0x9d   :  { %895 = vmatpush1.msra.mxu1 %v320_v55  ;;  %829 = vmatprep.subr.mxu0 %v181_v56  ;;  %v388_v54 = vld [vmem:[%s2749_s1 + $0xb10] sm:$0xff]  ;;  %v249_v55 = vld [vmem:[%s2749_s1 + $0x6b8] sm:$0xff] }
  0x9e   :  { %896 = vmatprep.subr.mxu1 %v317_v57  ;;  %830 = vmatpush1.msra.mxu0 %v180_v58  ;;  %v385_v56 = vld [vmem:[%s2749_s1 + $0xaf8] sm:$0xff]  ;;  %v248_v57 = vld [vmem:[%s2749_s1 + $0x6b0] sm:$0xff] }
  0x9f   :  { %897 = vmatpush1.msra.mxu1 %v316_v59  ;;  %831 = vmatprep.subr.mxu0 %v177_v60  ;;  %v384_v58 = vld [vmem:[%s2749_s1 + $0xaf0] sm:$0xff]  ;;  %v245_v59 = vld [vmem:[%s2749_s1 + $0x698] sm:$0xff] }
  0xa0   :  { %898 = vmatprep.subr.mxu1 %v313_v61  ;;  %832 = vmatpush1.msra.mxu0 %v176_v62  ;;  %v381_v60 = vld [vmem:[%s2749_s1 + $0xad8] sm:$0xff]  ;;  %v244_v61 = vld [vmem:[%s2749_s1 + $0x690] sm:$0xff] }
  0xa1   :  { %899 = vmatpush1.msra.mxu1 %v312_v0  ;;  %833 = vmatprep.subr.mxu0 %v173_v1  ;;  %v380_v62 = vld [vmem:[%s2749_s1 + $0xad0] sm:$0xff]  ;;  %v241_v0 = vld [vmem:[%s2749_s1 + $0x678] sm:$0xff] }
  0xa2   :  { %900 = vmatprep.subr.mxu1 %v309_v3  ;;  %834 = vmatpush1.msra.mxu0 %v172_v4  ;;  %v377_v1 = vld [vmem:[%s2749_s1 + $0xab8] sm:$0xff]  ;;  %v240_v3 = vld [vmem:[%s2749_s1 + $0x670] sm:$0xff] }
  0xa3   :  { %901 = vmatpush1.msra.mxu1 %v308_v5  ;;  %835 = vmatprep.subr.mxu0 %v169_v6  ;;  %v376_v4 = vld [vmem:[%s2749_s1 + $0xab0] sm:$0xff]  ;;  %v237_v5 = vld [vmem:[%s2749_s1 + $0x658] sm:$0xff] }
  0xa4   :  { %902 = vmatprep.subr.mxu1 %v305_v7  ;;  %836 = vmatpush1.msra.mxu0 %v168_v8  ;;  %v373_v6 = vld [vmem:[%s2749_s1 + $0xa98] sm:$0xff]  ;;  %v236_v7 = vld [vmem:[%s2749_s1 + $0x650] sm:$0xff] }
  0xa5   :  { %903 = vmatpush1.msra.mxu1 %v304_v9  ;;  %837 = vmatprep.subr.mxu0 %v165_v11  ;;  %v372_v8 = vld [vmem:[%s2749_s1 + $0xa90] sm:$0xff]  ;;  %v233_v9 = vld [vmem:[%s2749_s1 + $0x638] sm:$0xff] }
  0xa6   :  { %904 = vmatprep.subr.mxu1 %v301_v13  ;;  %838 = vmatpush1.msra.mxu0 %v164_v14  ;;  %v369_v11 = vld [vmem:[%s2749_s1 + $0xa78] sm:$0xff]  ;;  %v232_v13 = vld [vmem:[%s2749_s1 + $0x630] sm:$0xff] }
  0xa7   :  { %905 = vmatpush1.msra.mxu1 %v300_v15  ;;  %839 = vmatprep.subr.mxu0 %v289_v16  ;;  %v368_v14 = vld [vmem:[%s2749_s1 + $0xa70] sm:$0xff]  ;;  %v229_v15 = vld [vmem:[%s2749_s1 + $0x618] sm:$0xff] }
  0xa8   :  { %906 = vmatprep.subr.mxu1 %v297_v18  ;;  %840 = vmatpush2.msra.mxu0 %v288_v19  ;;  %v365_v16 = vld [vmem:[%s2749_s1 + $0xa58] sm:$0xff]  ;;  %v228_v18 = vld [vmem:[%s2749_s1 + $0x610] sm:$0xff] }
  0xa9   :  { %907 = vmatpush1.msra.mxu1 %v296_v20  ;;  %841 = vmatprep.subr.mxu0 %v285_v21  ;;  %v364_v19 = vld [vmem:[%s2749_s1 + $0xa50] sm:$0xff]  ;;  %v361_v20 = vld [vmem:[%s2749_s1 + $0xa38] sm:$0xff] }
  0xaa   :  { %908 = vmatprep.subr.mxu1 %v293_v22  ;;  %842 = vmatpush2.msra.mxu0 %v284_v23  ;;  %v425_v21 = vld [vmem:[%s2749_s1 + $0xc38] sm:$0xff]  ;;  %v360_v23 = vld [vmem:[%s2749_s1 + $0xa30] sm:$0xff] }
  0xab   :  { %909 = vmatpush1.msra.mxu1 %v292_v24  ;;  %843 = vmatprep.subr.mxu0 %v281_v25  ;;  %v1295_v22 = vld [vmem:[%s2750_s0 + $0x18] sm:$0xff]  ;;  %v424_v24 = vld [vmem:[%s2749_s1 + $0xc30] sm:$0xff] }
  0xac   :  { %910 = vmatprep.subr.mxu1 %v417_v26  ;;  %844 = vmatpush2.msra.mxu0 %v280_v27  ;;  %v1296_v25 = vld [vmem:[%s2750_s0 + $0x10] sm:$0xff]  ;;  %v357_v26 = vld [vmem:[%s2749_s1 + $0xa18] sm:$0xff] }
  0xad   :  { %911 = vmatpush2.msra.mxu1 %v416_v63  ;;  %845 = vmatprep.subr.mxu0 %v277_v28  ;;  %v421_v27 = vld [vmem:[%s2749_s1 + $0xc18] sm:$0xff]  ;;  %v356_v63 = vld [vmem:[%s2749_s1 + $0xa10] sm:$0xff] }
  0xae   :  { %912 = vmatprep.subr.mxu1 %v413_v2  ;;  %846 = vmatpush2.msra.mxu0 %v276_v29  ;;  %v420_v28 = vld [vmem:[%s2749_s1 + $0xc10] sm:$0xff]  ;;  %v1063_v2 = vld [vmem:[%s2751_s3 + $0xf8] sm:$0xff] }
  0xaf   :  { %913 = vmatpush2.msra.mxu1 %v412_v30  ;;  %847 = vmatprep.subr.mxu0 %v273_v31  ;;  %v1047_v29 = vld [vmem:[%s2751_s3 + $0x78] sm:$0xff]  ;;  %v1297_v30 = vld [vmem:[%s2750_s0 + $0x30] sm:$0xff] }
  0xb0   :  { %914 = vmatprep.subr.mxu1 %v409_v32  ;;  %848 = vmatpush2.msra.mxu0 %v272_v33  ;;  %v1046_v31 = vld [vmem:[%s2751_s3 + $0x70] sm:$0xff]  ;;  %v1045_v32 = vld [vmem:[%s2751_s3 + $0x68] sm:$0xff]  ;;  %v1079_v33 = vld [vmem:[%s2751_s3 + $0x178] sm:$0xff] }
  0xb1   :  { %915 = vmatpush2.msra.mxu1 %v408_v34  ;;  %849 = vmatprep.subr.mxu0 %v269_v35  ;;  %v1078_v34 = vld [vmem:[%s2751_s3 + $0x170] sm:$0xff]  ;;  %v1060_v35 = vld [vmem:[%s2751_s3 + $0xe0] sm:$0xff] }
  0xb2   :  { %916 = vmatprep.subr.mxu1 %v405_v36  ;;  %850 = vmatpush2.msra.mxu0 %v268_v37  ;;  %v1044_v36 = vld [vmem:[%s2751_s3 + $0x60] sm:$0xff]  ;;  %v1077_v37 = vld [vmem:[%s2751_s3 + $0x168] sm:$0xff] }
  0xb3   :  { %917 = vmatpush2.msra.mxu1 %v404_v38  ;;  %851 = vmatprep.subr.mxu0 %v265_v39  ;;  %v1059_v38 = vld [vmem:[%s2751_s3 + $0xd8] sm:$0xff] }
  0xb4   :  { %918 = vmatprep.subr.mxu1 %v401_v40  ;;  %852 = vmatpush2.msra.mxu0 %v264_v41  ;;  %v1043_v39 = vld [vmem:[%s2751_s3 + $0x58] sm:$0xff]  ;;  %v1076_v40 = vld [vmem:[%s2751_s3 + $0x160] sm:$0xff]  ;;  %v1058_v41 = vld [vmem:[%s2751_s3 + $0xd0] sm:$0xff] }
  0xb5   :  { %919 = vmatpush2.msra.mxu1 %v400_v42  ;;  %853 = vmatprep.subr.mxu0 %v261_v43  ;;  %v1042_v42 = vld [vmem:[%s2751_s3 + $0x50] sm:$0xff]  ;;  %v1075_v43 = vld [vmem:[%s2751_s3 + $0x158] sm:$0xff] }
  0xb6   :  { %920 = vmatprep.subr.mxu1 %v397_v44  ;;  %854 = vmatpush2.msra.mxu0 %v260_v45  ;;  %v1057_v44 = vld [vmem:[%s2751_s3 + $0xc8] sm:$0xff] }
  0xb7   :  { %921 = vmatpush2.msra.mxu1 %v396_v46  ;;  %855 = vmatprep.subr.mxu0 %v257_v47  ;;  %v1041_v45 = vld [vmem:[%s2751_s3 + $0x48] sm:$0xff]  ;;  %v1074_v46 = vld [vmem:[%s2751_s3 + $0x150] sm:$0xff]  ;;  %v1056_v47 = vld [vmem:[%s2751_s3 + $0xc0] sm:$0xff] }
  0xb8   :  { %922 = vmatprep.subr.mxu1 %v393_v48  ;;  %856 = vmatpush2.msra.mxu0 %v256_v49  ;;  %v1040_v48 = vld [vmem:[%s2751_s3 + $0x40] sm:$0xff]  ;;  %v1073_v49 = vld [vmem:[%s2751_s3 + $0x148] sm:$0xff] }
  0xb9   :  { %923 = vmatpush2.msra.mxu1 %v392_v50  ;;  %857 = vmatprep.subr.mxu0 %v253_v51  ;;  %v1055_v50 = vld [vmem:[%s2751_s3 + $0xb8] sm:$0xff] }
  0xba   :  { %924 = vmatprep.subr.mxu1 %v389_v52  ;;  %858 = vmatpush2.msra.mxu0 %v252_v53  ;;  %v1039_v51 = vld [vmem:[%s2751_s3 + $0x38] sm:$0xff]  ;;  %v1072_v52 = vld [vmem:[%s2751_s3 + $0x140] sm:$0xff]  ;;  %v1054_v53 = vld [vmem:[%s2751_s3 + $0xb0] sm:$0xff] }
  0xbb   :  { %925 = vmatpush2.msra.mxu1 %v388_v54  ;;  %859 = vmatprep.subr.mxu0 %v249_v55  ;;  %v1038_v54 = vld [vmem:[%s2751_s3 + $0x30] sm:$0xff]  ;;  %v1071_v55 = vld [vmem:[%s2751_s3 + $0x138] sm:$0xff] }
  0xbc   :  { %926 = vmatprep.subr.mxu1 %v385_v56  ;;  %860 = vmatpush2.msra.mxu0 %v248_v57  ;;  %v1053_v56 = vld [vmem:[%s2751_s3 + $0xa8] sm:$0xff] }
  0xbd   :  { %927 = vmatpush2.msra.mxu1 %v384_v58  ;;  %861 = vmatprep.subr.mxu0 %v245_v59  ;;  %v1037_v57 = vld [vmem:[%s2751_s3 + $0x28] sm:$0xff]  ;;  %v1070_v58 = vld [vmem:[%s2751_s3 + $0x130] sm:$0xff]  ;;  %v1052_v59 = vld [vmem:[%s2751_s3 + $0xa0] sm:$0xff] }
  0xbe   :  { %928 = vmatprep.subr.mxu1 %v381_v60  ;;  %862 = vmatpush2.msra.mxu0 %v244_v61  ;;  %v1036_v60 = vld [vmem:[%s2751_s3 + $0x20] sm:$0xff]  ;;  %v1051_v61 = vld [vmem:[%s2751_s3 + $0x98] sm:$0xff] }
  0xbf   :  { %929 = vmatpush2.msra.mxu1 %v380_v62  ;;  %863 = vmatprep.subr.mxu0 %v241_v0  ;;  %v1035_v62 = vld [vmem:[%s2751_s3 + $0x18] sm:$0xff]  ;;  %v1050_v0 = vld [vmem:[%s2751_s3 + $0x90] sm:$0xff] }
  0xc0   :  { %930 = vmatprep.subr.mxu1 %v377_v1  ;;  %864 = vmatpush2.msra.mxu0 %v240_v3  ;;  %v1034_v1 = vld [vmem:[%s2751_s3 + $0x10] sm:$0xff]  ;;  %v1049_v3 = vld [vmem:[%s2751_s3 + $0x88] sm:$0xff] }
  0xc1   :  { %931 = vmatpush2.msra.mxu1 %v376_v4  ;;  %865 = vmatprep.subr.mxu0 %v237_v5  ;;  %v1033_v4 = vld [vmem:[%s2751_s3 + $0x8] sm:$0xff]  ;;  %v1048_v5 = vld [vmem:[%s2751_s3 + $0x80] sm:$0xff] }
  0xc2   :  { %932 = vmatprep.subr.mxu1 %v373_v6  ;;  %866 = vmatpush2.msra.mxu0 %v236_v7  ;;  %v1032_v6 = vld [vmem:[%s2751_s3] sm:$0xff]  ;;  %v1069_v7 = vld [vmem:[%s2751_s3 + $0x128] sm:$0xff] }
  0xc3   :  { %933 = vmatpush2.msra.mxu1 %v372_v8  ;;  %867 = vmatprep.subr.mxu0 %v233_v9  ;;  %v1068_v8 = vld [vmem:[%s2751_s3 + $0x120] sm:$0xff]  ;;  %v1067_v9 = vld [vmem:[%s2751_s3 + $0x118] sm:$0xff] }
  0xc4   :  { %934 = vmatprep.subr.mxu1 %v369_v11  ;;  %868 = vmatpush2.msra.mxu0 %v232_v13  ;;  %v1066_v11 = vld [vmem:[%s2751_s3 + $0x110] sm:$0xff]  ;;  %v1065_v13 = vld [vmem:[%s2751_s3 + $0x108] sm:$0xff] }
  0xc5   :  { %935 = vmatpush2.msra.mxu1 %v368_v14  ;;  %869 = vmatprep.subr.mxu0 %v229_v15  ;;  %v1064_v14 = vld [vmem:[%s2751_s3 + $0x100] sm:$0xff]  ;;  %v1081_v15 = vld [vmem:[%s2751_s3 + $0x188] sm:$0xff] }
  0xc6   :  { %936 = vmatprep.subr.mxu1 %v365_v16  ;;  %870 = vmatpush2.msra.mxu0 %v228_v18  ;;  %v1080_v16 = vld [vmem:[%s2751_s3 + $0x180] sm:$0xff]  ;;  %v428_v18 = vlaneseq }
  0xc7   :  { %871 = vmatprep.mubr.f32.mxu0 %v1295_v22  ;;  %937 = vmatpush2.msra.mxu1 %v364_v19 }
  0xc8   :  { %872 = vmatmul.mubr.f32.vlgmr.msra.gmra.mxu0 %v1296_v25  ;;  %938 = vmatprep.subr.mxu1 %v361_v20  ;;  %v429_v19 = vshrl.u32 %v428_v18, 7 }
  0xc9   :  { %977 = vmatprep.subr.mxu0 %v425_v21  ;;  %939 = vmatpush2.msra.mxu1 %v360_v23  ;;  %v426_v21 = vld [vmem:[%s2752_s2] sm:$0xf] }
  0xca   :  { %978 = vmatpush1.msra.mxu0 %v424_v24  ;;  %940 = vmatprep.subr.mxu1 %v357_v26  ;;  %v430_v20 = vsub.s32 0, %v429_v19  ;;  %v434_v22 = vsub.s32 1, %v429_v19 }
  0xcb   :  { %979 = vmatprep.subr.mxu0 %v421_v27  ;;  %941 = vmatpush2.msra.mxu1 %v356_v63 }
  0xcc   :  { %942 = vmatprep.mubr.f32.mxu1 %v2130_v10  ;;  %980 = vmatpush1.msra.mxu0 %v420_v28  ;;  %v1062_v10 = vld [vmem:[%s2751_s3 + $0xf0] sm:$0xff]  ;;  %v431_v24 = vrot.slane %v426_v21, %v430_v20  ;;  %v435_v26 = vrot.slane %v426_v21, %v434_v22 }
  0xcd   :  { %1013 = vmatprep.mubr.f32.mxu0 %v1298_v17  ;;  %943 = vmatmul.mubr.f32.vlgmr.msra.gmra.mxu1 %v2138_v12  ;;  %v1061_v12 = vld [vmem:[%s2751_s3 + $0xe8] sm:$0xff] }
  0xce   :  { %1255 = vmatmul.mubr.msk.f32.vlgmr.msra.gmra.mxu0 %vm448_vm0, %v1297_v30  ;;  %1259 = vmatprep.subr.mxu0 %v1063_v2 }
  0xcf   :  { %1162 = vmatprep.subr.mxu1 %v1298_v17  ;;  %1260 = vmatpush3.msra.mxu0 %v1047_v29 }
  0xd0   :  { %1261 = vmatprep.subr.mxu0 %v1062_v10  ;;  %1163 = vmatpush1.msra.mxu1 %v1079_v33 }
  0xd1   :  { %1262 = vmatpush3.msra.mxu0 %v1046_v31  ;;  %1164 = vmatprep.subr.mxu1 %v1298_v17 }
  0xd2   :  { %1263 = vmatprep.subr.mxu0 %v1061_v12  ;;  %1165 = vmatpush1.msra.mxu1 %v1078_v34 }
  0xd3   :  { %1264 = vmatpush3.msra.mxu0 %v1045_v32  ;;  %1166 = vmatprep.subr.mxu1 %v1298_v17 }
  0xd4   :  { %1265 = vmatprep.subr.mxu0 %v1060_v35  ;;  %1167 = vmatpush1.msra.mxu1 %v1077_v37 }
  0xd5   :  { %1266 = vmatpush3.msra.mxu0 %v1044_v36  ;;  %1168 = vmatprep.subr.mxu1 %v1298_v17 }
  0xd6   :  { %1267 = vmatprep.subr.mxu0 %v1059_v38  ;;  %1169 = vmatpush1.msra.mxu1 %v1076_v40  ;;  %v438_v40 = vsub.s32 2, %v429_v19 }
  0xd7   :  { %1268 = vmatpush3.msra.mxu0 %v1043_v39  ;;  %1170 = vmatprep.subr.mxu1 %v1298_v17 }
  0xd8   :  { %1269 = vmatprep.subr.mxu0 %v1058_v41  ;;  %1171 = vmatpush1.msra.mxu1 %v1075_v43  ;;  %v442_v41 = vsub.s32 3, %v429_v19  ;;  %v439_v43 = vrot.slane %v426_v21, %v438_v40 }
  0xd9   :  { %1270 = vmatpush3.msra.mxu0 %v1042_v42  ;;  %1172 = vmatprep.subr.mxu1 %v1298_v17 }
  0xda   :  { %1271 = vmatprep.subr.mxu0 %v1057_v44  ;;  %1173 = vmatpush1.msra.mxu1 %v1074_v46 }
  0xdb   :  { %1272 = vmatpush3.msra.mxu0 %v1041_v45  ;;  %1174 = vmatprep.subr.mxu1 %v1298_v17  ;;  %v443_v45 = vrot.slane %v426_v21, %v442_v41 }
  0xdc   :  { %1273 = vmatprep.subr.mxu0 %v1056_v47  ;;  %1175 = vmatpush1.msra.mxu1 %v1073_v49 }
  0xdd   :  { %1274 = vmatpush3.msra.mxu0 %v1040_v48  ;;  %1176 = vmatprep.subr.mxu1 %v1298_v17 }
  0xde   :  { %1275 = vmatprep.subr.mxu0 %v1055_v50  ;;  %1177 = vmatpush1.msra.mxu1 %v1072_v52 }
  0xdf   :  { %1276 = vmatpush3.msra.mxu0 %v1039_v51  ;;  %1178 = vmatprep.subr.mxu1 %v1298_v17 }
  0xe0   :  { %1277 = vmatprep.subr.mxu0 %v1054_v53  ;;  %1179 = vmatpush1.msra.mxu1 %v1071_v55 }
  0xe1   :  { %1278 = vmatpush3.msra.mxu0 %v1038_v54  ;;  %1180 = vmatprep.subr.mxu1 %v1298_v17 }
  0xe2   :  { %1279 = vmatprep.subr.mxu0 %v1053_v56  ;;  %1181 = vmatpush1.msra.mxu1 %v1070_v58 }
  0xe3   :  { %1280 = vmatpush3.msra.mxu0 %v1037_v57  ;;  %1182 = vmatprep.subr.mxu1 %v1298_v17 }
  0xe4   :  { %1281 = vmatprep.subr.mxu0 %v1052_v59  ;;  %1183 = vmatpush1.msra.mxu1 %v1069_v7 }
  0xe5   :  { %1282 = vmatpush3.msra.mxu0 %v1036_v60  ;;  %1184 = vmatprep.subr.mxu1 %v1298_v17 }
  0xe6   :  { %1283 = vmatprep.subr.mxu0 %v1051_v61  ;;  %1185 = vmatpush1.msra.mxu1 %v1068_v8 }
  0xe7   :  { %1284 = vmatpush3.msra.mxu0 %v1035_v62  ;;  %1186 = vmatprep.subr.mxu1 %v1298_v17 }
  0xe8   :  { %1285 = vmatprep.subr.mxu0 %v1050_v0  ;;  %1187 = vmatpush1.msra.mxu1 %v1067_v9 }
  0xe9   :  { %1286 = vmatpush3.msra.mxu0 %v1034_v1  ;;  %1188 = vmatprep.subr.mxu1 %v1298_v17 }
  0xea   :  { %1287 = vmatprep.subr.mxu0 %v1049_v3  ;;  %1189 = vmatpush1.msra.mxu1 %v1066_v11 }
  0xeb   :  { %1288 = vmatpush3.msra.mxu0 %v1033_v4  ;;  %1190 = vmatprep.subr.mxu1 %v1298_v17 }
  0xec   :  { %1289 = vmatprep.subr.mxu0 %v1048_v5  ;;  %1191 = vmatpush1.msra.mxu1 %v1065_v13  ;;  %v1256_v5 = vld [vmem:[%s2753_s4] ss:$0 sm:$0xff] }
  0xed   :  { %1290 = vmatpush3.msra.mxu0 %v1032_v6  ;;  %1192 = vmatprep.subr.mxu1 %v1298_v17  ;;  %v1258_v13 = vld [vmem:[%s2754_s5] ss:$0 sm:$0xff] }
  0xee   :  { %1193 = vmatpush1.msra.mxu1 %v1064_v14 }
  0xef   :  { %1222 = vmatprep.subr.mxu1 %v1298_v17 }
  0xf0   :  { %1223 = vmatpush2.msra.mxu1 %v1081_v15 }
  0xf1   :  { %1224 = vmatprep.subr.mxu1 %v1298_v17 }
  0xf2   :  { %1225 = vmatpush2.msra.mxu1 %v1080_v16  ;;  %v1246_v16 = vstv %s2755_s6 }
 0x103   :  { %v518_v23 = vpop.f32.mrf.mxu0 }
 0x104   :  { %v589_v25 = vpop.f32.mrf.mxu1  ;;  %v519_v63 = vadd.f32 %v518_v23, %v431_v24 }
 0x105   :  { %v520_v27 = vpop.f32.mrf.mxu0 }
 0x106   :  { %v591_v28 = vpop.f32.mrf.mxu1  ;;  %v521_v2 = vadd.f32 %v520_v27, %v435_v26  ;;  %v590_v29 = vadd.f32 %v589_v25, %v519_v63 }
 0x108   :  { %v592_v10 = vadd.f32 %v591_v28, %v521_v2 }
 0x109   :  { %v731_v30 = vpop.f32.mrf.mxu1 }
 0x10b   :  { %v733_v34 = vpop.f32.mrf.mxu1 }
 0x146   :  { %v660_v17 = vpop.f32.mrf.mxu0 }
 0x147   :  { %v661_v31 = vadd.f32 %v660_v17, %v590_v29 }
 0x148   :  { %v662_v12 = vpop.f32.mrf.mxu0 }
 0x149   :  { %v732_v32 = vadd.f32 %v731_v30, %v661_v31  ;;  %v663_v33 = vadd.f32 %v662_v12, %v592_v10 }
 0x14b   :  { %v734_v35 = vadd.f32 %v733_v34, %v663_v33  ;;  %v1024_v36 = vmul.f32 0.2, %v732_v32  ;;  %vm1020_vm2 = vcmp.gt.f32.partialorder %v732_v32, 0.0  ;;  %v802_v42 = vpop.f32.mrf.mxu1 }
 0x14c   :  { %v803_v48 = vadd.f32 %v802_v42, %v439_v43 }
 0x14d   :  { %vm1021_vm1 = vcmp.gt.f32.partialorder %v734_v35, 0.0  ;;  %v1025_v37 = vmul.f32 0.2, %v734_v35  ;;  %v1028_v39 = vsel %vm1020_vm2, %v732_v32, %v1024_v36  ;;  %v804_v46 = vpop.f32.mrf.mxu1 }
 0x14e   :  { %v805_v49 = vadd.f32 %v804_v46, %v443_v45 }
 0x14f   :  { %v1029_v38 = vsel %vm1021_vm1, %v734_v35, %v1025_v37 }
 0x150   :  { %1156 = vmatprep.mubr.f32.mxu0 %v1029_v38 }
 0x151   :  { %1157 = vmatmul.mubr.f32.vlgmr.msra.gmra.mxu0 %v1028_v39 }
 0x188   :  { %v873_v44 = vpop.f32.mrf.mxu0 }
 0x189   :  { %v874_v50 = vadd.f32 %v873_v44, %v803_v48 }
 0x18a   :  { %v875_v47 = vpop.f32.mrf.mxu0 }
 0x18b   :  { %v876_v53 = vadd.f32 %v875_v47, %v805_v49 }
 0x18d   :  { %v944_v51 = vpop.f32.mrf.mxu1 }
 0x18e   :  { %v1015_v52 = vpop.f32.mrf.mxu0  ;;  %v945_v54 = vadd.f32 %v944_v51, %v874_v50 }
 0x18f   :  { %v946_v55 = vpop.f32.mrf.mxu1 }
 0x190   :  { %v1016_v56 = vadd.f32 %v1015_v52, %v945_v54  ;;  %v947_v57 = vadd.f32 %v946_v55, %v876_v53  ;;  %v1017_v58 = vpop.f32.mrf.mxu0 }
 0x192   :  { %v1018_v59 = vadd.f32 %v1017_v58, %v947_v57  ;;  %v1026_v60 = vmul.f32 0.2, %v1016_v56  ;;  %vm1022_vm3 = vcmp.gt.f32.partialorder %v1016_v56, 0.0 }
 0x194   :  { %vm1023_vm4 = vcmp.gt.f32.partialorder %v1018_v59, 0.0  ;;  %v1027_v61 = vmul.f32 0.2, %v1018_v59  ;;  %v1030_v0 = vsel %vm1022_vm3, %v1016_v56, %v1026_v60 }
 0x196   :  { %v1031_v62 = vsel %vm1023_vm4, %v1018_v59, %v1027_v61 }
 0x197   :  { %1257 = vmatprep.mubr.msk.f32.mxu1 %vm448_vm0, %v1031_v62 }
 0x198   :  { %1227 = vmatmul.mubr.f32.vlgmr.msra.gmra.mxu1 %v1030_v0 }
 0x211   :  { %v1291_v1 = vpop.f32.mrf.mxu0 }
 0x213   :  { %v1292_v3 = vpop.f32.mrf.mxu0 }
 0x214   :  { %v1293_v4 = vadd.f32 %v1292_v3, %v1291_v1 }
 0x216   :  { %v1159_v6 = vadd.f32 %v1293_v4, %v1256_v5 }
 0x258   :  { %v1228_v7 = vpop.f32.mrf.mxu1 }
 0x259   :  { %v1229_v8 = vadd.f32 %v1228_v7, %v1159_v6 }
 0x25a   :  { %v1230_v9 = vpop.f32.mrf.mxu1 }
 0x25b   :  { %v1233_v11 = vmul.f32 0.2, %v1229_v8  ;;  %vm1232_vm5 = vcmp.gt.f32.partialorder %v1229_v8, 0.0 }
 0x25d   :  { %v1234_v14 = vsel %vm1232_vm5, %v1229_v8, %v1233_v11 }
 0x25e   :  { %v1242_v15 = vmul.f32 %v1258_v13, %v1234_v14 }
 0x260   :  { %1243 = vadd.xlane.f32.xlu0 %v1242_v15 }
 0x2e9   :  { %v1244_v18 = vpop.xlane.xlu0 %1243 }
 0x2ea   :  { %v1247_v19 = vadd.f32 %v1246_v16, %v1244_v18 }
 0x2ec   :  { %1249 = vst.msk [vmem:[%s2756_s7] sm:$0xff] %vm1248_vm6, %v1247_v19 }

</bundles_post_ra>
